<compile_context>
chip_gen: v7x
topology: tpu7x:2x2x1
jax: 0.10.0
libtpu: 0.0.40
codegen_flags: <defaults>
</compile_context>

<pallas_src>
import inspect

import jax
import jax.numpy as jnp
import numpy as np
from jax import lax
from jax.experimental import pallas as pl
from jax.experimental.pallas import tpu as pltpu

_HAS_PIPELINE_MODE = (hasattr(pl, "Buffered")
                      and "pipeline_mode" in inspect.signature(pl.BlockSpec).parameters)

_HALO = 16  # phase-rows of the next tile DMA'd as a tiny side input (needs >= 2//s0 + 2)


def _round_up(x, m):
    return (x + m - 1) // m * m


def _choose_tl(l1, n_batch):
    """Output rows per grid step."""
    tl = min(_round_up(l1, 16), 512)          # large tiles: fewer steps, fuller MXU
    # v7x shards "parallel" grid axes over 2 TensorCores: keep at least 2 grid steps.
    if n_batch * ((l1 + tl - 1) // tl) < 2 and l1 > 16:
        tl = _round_up((l1 + 1) // 2, 16)
    return tl


# ------------------------------ fused Pallas kernel ------------------------------
def _make_fused_kernel(TL, s0, cin_p, cout_p, nL, L1, HALO):
    t_l1 = L1 - (nL - 1) * TL + 1             # h row holding j == L1 (last tile only)
    assert 2 <= t_l1 <= TL + 1
    assert HALO >= 2 // s0 + 2 and HALO >= (s0 + 1) // s0   # window reads stay in range

    def kernel(xm_ref, xh_ref, w1_ref, w2_ref, we_ref, b1_ref, b2_ref,
               o_ref, xw_ref, h_ref):
        # xm_ref: (1, TL, s0*cin_p)      bf16  main x block of this (n, l) tile
        # xh_ref: (1, 1, HALO, s0*cin_p) bf16  first HALO phase-rows of the next tile
        # w1_ref: (3*cin_p, cout_p)      bf16  conv1 weights, BN1 scale folded
        # w2_ref: (3*cout_p, cout_p)     bf16  conv2 weights, BN2 scale folded
        # we_ref: (cin_p, cout_p)        bf16  1x1 shortcut weights, BN_e scale folded
        # b1_ref: (1, cout_p) f32             conv1 bias + BN1 shift
        # b2_ref: (1, cout_p) f32             conv2/shortcut biases + BN shifts
        # o_ref : (1, TL, cout_p) bf16        output rows l*TL .. l*TL+TL-1
        # xw_ref: (TL+HALO, s0*cin_p) bf16    contiguous per-tile x window (scratch)
        # h_ref : (TL+2, cout_p) bf16         relu(bn1(conv1(x))) incl. 2 halo rows
        l = pl.program_id(1)

        # Contiguous window: xw[i, ph*cin_p + c] == padded-x row s0*(l*TL + i) + ph.
        xw_ref[0:TL, :] = xm_ref[0]
        xw_ref[TL:TL + HALO, :] = xh_ref[0, 0]

        # ---- stage 1: h[t] = relu(bn1(conv1(x))) for j = l*TL - 1 + t, t = 0..TL+1 ----
        acc1 = jnp.zeros((TL + 2, cout_p), jnp.float32)
        for k in range(3):                     # 3 taps -> 3 accumulated MXU matmuls
            ph, off = k % s0, k // s0
            xk = xw_ref[off:off + TL + 2, ph * cin_p:(ph + 1) * cin_p]
            acc1 += jnp.dot(xk, w1_ref[k * cin_p:(k + 1) * cin_p, :],
                            preferred_element_type=jnp.float32)
        h_ref[...] = jnp.maximum(acc1 + b1_ref[...], 0.0).astype(h_ref.dtype)

        # conv2's zero padding: h must be 0 exactly at j == -1 (first tile) and
        # j == L1 (last tile).  Rows with j > L1 only feed outputs the wrapper slices off.
        @pl.when(l == 0)
        def _():
            h_ref[0:1, :] = jnp.zeros((1, cout_p), h_ref.dtype)

        @pl.when(l == nL - 1)
        def _():
            h_ref[t_l1:t_l1 + 1, :] = jnp.zeros((1, cout_p), h_ref.dtype)

        # ---- stage 2: relu( bn2(conv2(h)) + bn_e(conv1x1_stride(x)) ) ----------------
        ph, off = (s0 + 1) % s0, (s0 + 1) // s0          # shortcut reads x[s0 * j]
        xs = xw_ref[off:off + TL, ph * cin_p:(ph + 1) * cin_p]
        acc2 = jnp.dot(xs, we_ref[...], preferred_element_type=jnp.float32)
        for k in range(3):
            acc2 += jnp.dot(h_ref[k:k + TL, :], w2_ref[k * cout_p:(k + 1) * cout_p, :],
                            preferred_element_type=jnp.float32)
        o_ref[0] = jnp.maximum(acc2 + b2_ref[...], 0.0).astype(o_ref.dtype)

    return kernel


# --------------------------------- glue / wrapper ---------------------------------
def _fold_bn(gamma, beta, mean, var, eps):
    scale = gamma / jnp.sqrt(var + eps)
    return scale, beta - mean * scale


def _pad_to(a, shape):
    return jnp.pad(a, [(0, t - s) for s, t in zip(a.shape, shape)])


def restnet_down_block_forward(x_ncl, p, stride, eps=1e-5, *,
                               channels_last_out=False, single_buffer_weights=True):
    """Pallas implementation of RestNetDownBlock.forward (inference-mode BatchNorm)."""
    s0, s1 = int(stride[0]), int(stride[1])
    assert s1 == 1, "stride[1] must be 1 (otherwise the residual add would not match)"
    assert s0 >= 1

    N, cin, L = x_ncl.shape
    cout = p["w1"].shape[0]
    L1 = (L - 1) // s0 + 1                      # output length of conv1 / shortcut

    cin_p, cout_p = _round_up(cin, 128), _round_up(cout, 128)
    TL = _choose_tl(L1, N)
    nL = (L1 + TL - 1) // TL
    HALO = _HALO

    # ---- fold inference-mode BN into conv weights / biases; weights -> bf16 --------
    # TODO(synk): keep a per-channel f32 scale instead of folding into bf16 weights if
    #             extreme gamma/sqrt(var) ratios ever hurt accuracy.
    sc1, sh1 = _fold_bn(p["bn1_g"], p["bn1_b"], p["bn1_m"], p["bn1_v"], eps)
    sc2, sh2 = _fold_bn(p["bn2_g"], p["bn2_b"], p["bn2_m"], p["bn2_v"], eps)
    sce, she = _fold_bn(p["bne_g"], p["bne_b"], p["bne_m"], p["bne_v"], eps)

    w1 = jnp.transpose(p["w1"] * sc1[:, None, None], (2, 1, 0))          # (3, cin, cout)
    w1 = _pad_to(w1, (3, cin_p, cout_p)).reshape(3 * cin_p, cout_p).astype(jnp.bfloat16)
    w2 = jnp.transpose(p["w2"] * sc2[:, None, None], (2, 1, 0))          # (3, cout, cout)
    w2 = _pad_to(w2, (3, cout_p, cout_p)).reshape(3 * cout_p, cout_p).astype(jnp.bfloat16)
    we = jnp.transpose(p["we"][:, :, 0] * sce[:, None], (1, 0))          # (cin, cout)
    we = _pad_to(we, (cin_p, cout_p)).astype(jnp.bfloat16)

    b1 = _pad_to(p["b1"] * sc1 + sh1, (cout_p,)).reshape(1, cout_p).astype(jnp.float32)
    b2 = _pad_to((p["b2"] * sc2 + sh2) + (p["be"] * sce + she),
                 (cout_p,)).reshape(1, cout_p).astype(jnp.float32)

    # ---- channels-last bf16 x, padded once, then *reshaped* (no copy) to the
    # phase-in-lanes layout: x_ph[n, i, ph*cin_p + c] = x_pad[n, s0*i + ph, c]. --------
    Lph = nL * TL + HALO
    Lp = s0 * Lph
    x_cl = jnp.transpose(x_ncl, (0, 2, 1)).astype(jnp.bfloat16)          # (N, L, cin)
    x_p = jnp.pad(x_cl, ((0, 0), (s0 + 1, Lp - L - (s0 + 1)), (0, cin_p - cin)))
    x_ph = x_p.reshape(N, Lph, s0 * cin_p)

    # Tiny halo side input: first HALO phase-rows of the *next* tile (~HALO/TL of x),
    # so the main x BlockSpec stays non-overlapping and fully auto-pipelined.
    rows = (jnp.arange(nL)[:, None] + 1) * TL + jnp.arange(HALO)[None, :]
    x_halo = x_ph[:, rows, :]                                            # (N,nL,HALO,s0*cin_p)

    single_buf = bool(single_buffer_weights) and _HAS_PIPELINE_MODE

    def _resident_spec(shape):                  # constant-index (grid-invariant) operand
        idx = lambda n, l: (0,) * len(shape)
        if single_buf:
            return pl.BlockSpec(shape, idx, pipeline_mode=pl.Buffered(1))
        return pl.BlockSpec(shape, idx)

    # vmem limit from the actual per-step footprint (resident weights + double-buffered
    # streams + scratch), clamped to stay safe on every generation (v7x: 64 MiB/TC).
    w_bytes = (w1.size + w2.size + we.size) * 2 + (b1.size + b2.size) * 4
    stream_bytes = 2 * ((TL + HALO) * s0 * cin_p + TL * cout_p) * 2
    scratch_bytes = ((TL + HALO) * s0 * cin_p + (TL + 2) * cout_p) * 2
    need = (1 if single_buf else 2) * w_bytes + stream_bytes + scratch_bytes
    vmem_limit = int(min(max(int(1.4 * need) + (8 << 20), 32 << 20), 64 << 20))

    flops = 2 * N * nL * ((TL + 2) * 3 * cin_p * cout_p
                          + TL * (3 * cout_p + cin_p) * cout_p)
    bytes_accessed = ((x_ph.size + x_halo.size + w1.size + w2.size + we.size) * 2
                      + (b1.size + b2.size) * 4 + N * nL * TL * cout_p * 2)

    out = pl.pallas_call(
        _make_fused_kernel(TL, s0, cin_p, cout_p, nL, L1, HALO),
        out_shape=jax.ShapeDtypeStruct((N, nL * TL, cout_p), jnp.bfloat16),
        grid=(N, nL),
        in_specs=[
            pl.BlockSpec((1, TL, s0 * cin_p), lambda n, l: (n, l, 0)),
            pl.BlockSpec((1, 1, HALO, s0 * cin_p), lambda n, l: (n, l, 0, 0)),
            _resident_spec((3 * cin_p, cout_p)),
            _resident_spec((3 * cout_p, cout_p)),
            _resident_spec((cin_p, cout_p)),
            _resident_spec((1, cout_p)),
            _resident_spec((1, cout_p)),
        ],
        out_specs=pl.BlockSpec((1, TL, cout_p), lambda n, l: (n, l, 0)),
        scratch_shapes=[
            pltpu.VMEM((TL + HALO, s0 * cin_p), jnp.bfloat16),   # contiguous x window
            pltpu.VMEM((TL + 2, cout_p), jnp.bfloat16),          # h = relu(bn1(conv1))
        ],
        compiler_params=pltpu.CompilerParams(
            dimension_semantics=("parallel", "parallel"),
            vmem_limit_bytes=vmem_limit),
        cost_estimate=pl.CostEstimate(flops=flops, transcendentals=0,
                                      bytes_accessed=bytes_accessed),
    )(x_ph, x_halo, w1, w2, we, b1, b2)

    if channels_last_out:                       # lane-dense bf16, no extra HBM pass
        return out[:, :L1, :cout]
    # PyTorch layout/dtype: slice + transpose + f32 cast fuse into one XLA pass.
    return jnp.transpose(out[:, :L1, :cout], (0, 2, 1)).astype(jnp.float32)


# ------------------------------ pure-JAX reference --------------------------------
def reference_forward(x, p, stride, eps=1e-5):
    def conv1d(x, w, b, s, pad):
        y = lax.conv_general_dilated(
            x, w, window_strides=(s,), padding=[(pad, pad)],
            dimension_numbers=("NCH", "OIH", "NCH"))
        return y + b[None, :, None]

    def bn(y, g, beta, m, v):
        return (y - m[None, :, None]) * (g / jnp.sqrt(v + eps))[None, :, None] \
            + beta[None, :, None]

    extra = bn(conv1d(x, p["we"], p["be"], stride[0], 0),
               p["bne_g"], p["bne_b"], p["bne_m"], p["bne_v"])
    out = jax.nn.relu(bn(conv1d(x, p["w1"], p["b1"], stride[0], 1),
                         p["bn1_g"], p["bn1_b"], p["bn1_m"], p["bn1_v"]))
    out = bn(conv1d(out, p["w2"], p["b2"], stride[1], 1),
             p["bn2_g"], p["bn2_b"], p["bn2_m"], p["bn2_v"])
    return jax.nn.relu(extra + out)


# ------------------------------------ params --------------------------------------
def init_params(key, cin, cout):
    ks = iter(jax.random.split(key, 20))
    nrm = lambda shape, s=0.1: s * jax.random.normal(next(ks), shape, jnp.float32)
    p = {
        "w1": nrm((cout, cin, 3)), "b1": nrm((cout,)),
        "w2": nrm((cout, cout, 3)), "b2": nrm((cout,)),
        "we": nrm((cout, cin, 1)), "be": nrm((cout,)),
    }
    for name in ("bn1", "bn2", "bne"):
        p[f"{name}_g"] = 1.0 + nrm((cout,))
        p[f"{name}_b"] = nrm((cout,))
        p[f"{name}_m"] = nrm((cout,))
        p[f"{name}_v"] = 1.0 + jnp.abs(nrm((cout,)))
    return p


def _check(key, N, Cin, Cout, L, stride, single_buffer):
    k_x, k_p = jax.random.split(key)
    x = jax.random.normal(k_x, (N, Cin, L), jnp.float32)
    params = init_params(k_p, Cin, Cout)
    fwd = jax.jit(lambda xx, pp: restnet_down_block_forward(
        xx, pp, stride, single_buffer_weights=single_buffer))
    out = jax.block_until_ready(fwd(x, params))
    ref = reference_forward(x, params, stride)
    L1 = (L - 1) // stride[0] + 1
    assert out.shape == ref.shape == (N, Cout, L1), (out.shape, ref.shape)
    # bf16 operands / output with f32 accumulation -> looser tolerance than pure f32.
    np.testing.assert_allclose(np.asarray(out), np.asarray(ref), atol=3e-2, rtol=3e-2)


if __name__ == "__main__":
    key = jax.random.PRNGKey(0)
    ks = jax.random.split(key, 3)
    cases = [
        (2, 4, 8, 16, (2, 1)),     # primary small case (single tile)
        (1, 8, 16, 200, (2, 1)),   # batch 1 -> grid rebalanced to 2 L-tiles (halo path)
        (2, 8, 8, 64, (1, 1)),     # stride-1 path
    ]
    try:
        for k, c in zip(ks, cases):
            _check(k, *c, single_buffer=True)
    except Exception:
        # Older JAX without BlockSpec(pipeline_mode=pl.Buffered(1)): retry with the
        # default double-buffered resident weights (same kernel otherwise).
        for k, c in zip(ks, cases):
            _check(k, *c, single_buffer=False)
    print("KERNEL_OK")
</pallas_src>

<mosaic_0001>
module attributes {stable_mosaic.version = 11 : i64} {
  func.func @kernel(%arg0: i32, %arg1: i32, %arg2: memref<1x16x256xbf16, #tpu.memory_space<vmem>>, %arg3: memref<1x1x16x256xbf16, #tpu.memory_space<vmem>>, %arg4: memref<384x128xbf16, #tpu.memory_space<vmem>>, %arg5: memref<384x128xbf16, #tpu.memory_space<vmem>>, %arg6: memref<128x128xbf16, #tpu.memory_space<vmem>>, %arg7: memref<1x128xf32, #tpu.memory_space<vmem>>, %arg8: memref<1x128xf32, #tpu.memory_space<vmem>>, %arg9: memref<1x16x128xbf16, #tpu.memory_space<vmem>>, %arg10: memref<32x256xbf16, #tpu.memory_space<vmem>>, %arg11: memref<18x128xbf16, #tpu.memory_space<vmem>>) attributes {dimension_semantics = [#tpu.dimension_semantics<parallel>, #tpu.dimension_semantics<parallel>], iteration_bounds = array<i64: 2, 1>, scalar_prefetch = 0 : i64, scratch_operands = 2 : i64, tpu.core_type = #tpu.core_type<tc>, window_params = [{transform_indices = @transform_0, window_bounds = array<i64: 1, 16, 256>}, {transform_indices = @transform_1, window_bounds = array<i64: 1, 1, 16, 256>}, {pipeline_mode = #tpu.pipeline_mode<synchronous>, transform_indices = @transform_2, window_bounds = array<i64: 384, 128>}, {pipeline_mode = #tpu.pipeline_mode<synchronous>, transform_indices = @transform_3, window_bounds = array<i64: 384, 128>}, {pipeline_mode = #tpu.pipeline_mode<synchronous>, transform_indices = @transform_4, window_bounds = array<i64: 128, 128>}, {pipeline_mode = #tpu.pipeline_mode<synchronous>, transform_indices = @transform_5, window_bounds = array<i64: 1, 128>}, {pipeline_mode = #tpu.pipeline_mode<synchronous>, transform_indices = @transform_6, window_bounds = array<i64: 1, 128>}, {transform_indices = @transform_7, window_bounds = array<i64: 1, 16, 128>}]} {
    %c0 = arith.constant 0 : index
    %c0_0 = arith.constant 0 : index
    %c0_1 = arith.constant 0 : index
    %0 = vector.load %arg2[%c0, %c0_0, %c0_1] : memref<1x16x256xbf16, #tpu.memory_space<vmem>>, vector<1x16x256xbf16>
    %1 = vector.shape_cast %0 : vector<1x16x256xbf16> to vector<16x256xbf16>
    %c0_2 = arith.constant 0 : index
    %c0_3 = arith.constant 0 : index
    %2 = vector.load %arg10[%c0_2, %c0_3] : memref<32x256xbf16, #tpu.memory_space<vmem>>, vector<16x256xbf16>
    tpu.vector_store %arg10[%c0_2, %c0_3], %1 {strides = array<i32>} : memref<32x256xbf16, #tpu.memory_space<vmem>>, vector<16x256xbf16>,
    %c0_4 = arith.constant 0 : index
    %c0_5 = arith.constant 0 : index
    %c0_6 = arith.constant 0 : index
    %c0_7 = arith.constant 0 : index
    %3 = vector.load %arg3[%c0_4, %c0_5, %c0_6, %c0_7] : memref<1x1x16x256xbf16, #tpu.memory_space<vmem>>, vector<1x1x16x256xbf16>
    %4 = vector.shape_cast %3 : vector<1x1x16x256xbf16> to vector<16x256xbf16>
    %c16 = arith.constant 16 : index
    %c0_8 = arith.constant 0 : index
    %5 = vector.load %arg10[%c16, %c0_8] : memref<32x256xbf16, #tpu.memory_space<vmem>>, vector<16x256xbf16>
    tpu.vector_store %arg10[%c16, %c0_8], %4 {strides = array<i32>} : memref<32x256xbf16, #tpu.memory_space<vmem>>, vector<16x256xbf16>,
    %cst = arith.constant 0.000000e+00 : f32
    %6 = vector.broadcast %cst : f32 to vector<18x128xf32>
    %c0_9 = arith.constant 0 : index
    %c0_10 = arith.constant 0 : index
    %7 = vector.load %arg10[%c0_9, %c0_10] : memref<32x256xbf16, #tpu.memory_space<vmem>>, vector<18x128xbf16>
    %c0_11 = arith.constant 0 : index
    %c0_12 = arith.constant 0 : index
    %8 = vector.load %arg4[%c0_11, %c0_12] : memref<384x128xbf16, #tpu.memory_space<vmem>>, vector<128x128xbf16>
    %cst_13 = arith.constant dense<0.000000e+00> : vector<18x128xf32>
    %9 = tpu.matmul %7, %8, %cst_13 {dimension_numbers = #tpu.dot_dimension_numbers<[1], [0], [0], [1], [0, 0, 1, 1], [], []>} : vector<18x128xbf16>, vector<128x128xbf16>, vector<18x128xf32> -> vector<18x128xf32>
    %10 = arith.addf %6, %9 : vector<18x128xf32>
    %c0_14 = arith.constant 0 : index
    %c128 = arith.constant 128 : index
    %11 = vector.load %arg10[%c0_14, %c128] : memref<32x256xbf16, #tpu.memory_space<vmem>>, vector<18x128xbf16>
    %c128_15 = arith.constant 128 : index
    %c0_16 = arith.constant 0 : index
    %12 = vector.load %arg4[%c128_15, %c0_16] : memref<384x128xbf16, #tpu.memory_space<vmem>>, vector<128x128xbf16>
    %cst_17 = arith.constant dense<0.000000e+00> : vector<18x128xf32>
    %13 = tpu.matmul %11, %12, %cst_17 {dimension_numbers = #tpu.dot_dimension_numbers<[1], [0], [0], [1], [0, 0, 1, 1], [], []>} : vector<18x128xbf16>, vector<128x128xbf16>, vector<18x128xf32> -> vector<18x128xf32>
    %14 = arith.addf %10, %13 : vector<18x128xf32>
    %c1 = arith.constant 1 : index
    %c0_18 = arith.constant 0 : index
    %15 = vector.load %arg10[%c1, %c0_18] : memref<32x256xbf16, #tpu.memory_space<vmem>>, vector<18x128xbf16>
    %c256 = arith.constant 256 : index
    %c0_19 = arith.constant 0 : index
    %16 = vector.load %arg4[%c256, %c0_19] : memref<384x128xbf16, #tpu.memory_space<vmem>>, vector<128x128xbf16>
    %cst_20 = arith.constant dense<0.000000e+00> : vector<18x128xf32>
    %17 = tpu.matmul %15, %16, %cst_20 {dimension_numbers = #tpu.dot_dimension_numbers<[1], [0], [0], [1], [0, 0, 1, 1], [], []>} : vector<18x128xbf16>, vector<128x128xbf16>, vector<18x128xf32> -> vector<18x128xf32>
    %18 = arith.addf %14, %17 : vector<18x128xf32>
    %c0_21 = arith.constant 0 : index
    %c0_22 = arith.constant 0 : index
    %19 = vector.load %arg7[%c0_21, %c0_22] : memref<1x128xf32, #tpu.memory_space<vmem>>, vector<1x128xf32>
    %20 = vector.broadcast %19 : vector<1x128xf32> to vector<18x128xf32>
    %21 = arith.addf %18, %20 : vector<18x128xf32>
    %cst_23 = arith.constant 0.000000e+00 : f32
    %22 = vector.broadcast %cst_23 : f32 to vector<18x128xf32>
    %23 = arith.maximumf %21, %22 : vector<18x128xf32>
    %24 = arith.truncf %23 : vector<18x128xf32> to vector<18x128xbf16>
    %c0_24 = arith.constant 0 : index
    %c0_25 = arith.constant 0 : index
    %25 = vector.load %arg11[%c0_24, %c0_25] : memref<18x128xbf16, #tpu.memory_space<vmem>>, vector<18x128xbf16>
    tpu.vector_store %arg11[%c0_24, %c0_25], %24 {strides = array<i32>} : memref<18x128xbf16, #tpu.memory_space<vmem>>, vector<18x128xbf16>,
    %c0_i32 = arith.constant 0 : i32
    %26 = arith.cmpi eq, %arg1, %c0_i32 : i32
    %27 = arith.extui %26 : i1 to i32
    %c0_i32_26 = arith.constant 0 : i32
    %28 = arith.cmpi ne, %27, %c0_i32_26 : i32
    scf.if %28 {
      %cst_54 = arith.constant 0.000000e+00 : bf16
      %56 = vector.broadcast %cst_54 : bf16 to vector<1x128xbf16>
      %c0_55 = arith.constant 0 : index
      %c0_56 = arith.constant 0 : index
      %57 = vector.load %arg11[%c0_55, %c0_56] : memref<18x128xbf16, #tpu.memory_space<vmem>>, vector<1x128xbf16>
      tpu.vector_store %arg11[%c0_55, %c0_56], %56 {strides = array<i32>} : memref<18x128xbf16, #tpu.memory_space<vmem>>, vector<1x128xbf16>,
    } else {
    }
    %c0_i32_27 = arith.constant 0 : i32
    %29 = arith.cmpi eq, %arg1, %c0_i32_27 : i32
    %30 = arith.extui %29 : i1 to i32
    %c0_i32_28 = arith.constant 0 : i32
    %31 = arith.cmpi ne, %30, %c0_i32_28 : i32
    scf.if %31 {
      %cst_54 = arith.constant 0.000000e+00 : bf16
      %56 = vector.broadcast %cst_54 : bf16 to vector<1x128xbf16>
      %c9 = arith.constant 9 : index
      %c0_55 = arith.constant 0 : index
      %57 = vector.load %arg11[%c9, %c0_55] : memref<18x128xbf16, #tpu.memory_space<vmem>>, vector<1x128xbf16>
      tpu.vector_store %arg11[%c9, %c0_55], %56 {strides = array<i32>} : memref<18x128xbf16, #tpu.memory_space<vmem>>, vector<1x128xbf16>,
    } else {
    }
    %c1_29 = arith.constant 1 : index
    %c128_30 = arith.constant 128 : index
    %32 = vector.load %arg10[%c1_29, %c128_30] : memref<32x256xbf16, #tpu.memory_space<vmem>>, vector<16x128xbf16>
    %c0_31 = arith.constant 0 : index
    %c0_32 = arith.constant 0 : index
    %33 = vector.load %arg6[%c0_31, %c0_32] : memref<128x128xbf16, #tpu.memory_space<vmem>>, vector<128x128xbf16>
    %cst_33 = arith.constant dense<0.000000e+00> : vector<16x128xf32>
    %34 = tpu.matmul %32, %33, %cst_33 {dimension_numbers = #tpu.dot_dimension_numbers<[1], [0], [0], [1], [0, 0, 1, 1], [], []>} : vector<16x128xbf16>, vector<128x128xbf16>, vector<16x128xf32> -> vector<16x128xf32>
    %c0_34 = arith.constant 0 : index
    %c0_35 = arith.constant 0 : index
    %35 = vector.load %arg11[%c0_34, %c0_35] : memref<18x128xbf16, #tpu.memory_space<vmem>>, vector<16x128xbf16>
    %c0_36 = arith.constant 0 : index
    %c0_37 = arith.constant 0 : index
    %36 = vector.load %arg5[%c0_36, %c0_37] : memref<384x128xbf16, #tpu.memory_space<vmem>>, vector<128x128xbf16>
    %cst_38 = arith.constant dense<0.000000e+00> : vector<16x128xf32>
    %37 = tpu.matmul %35, %36, %cst_38 {dimension_numbers = #tpu.dot_dimension_numbers<[1], [0], [0], [1], [0, 0, 1, 1], [], []>} : vector<16x128xbf16>, vector<128x128xbf16>, vector<16x128xf32> -> vector<16x128xf32>
    %38 = arith.addf %34, %37 : vector<16x128xf32>
    %c1_39 = arith.constant 1 : index
    %c0_40 = arith.constant 0 : index
    %39 = vector.load %arg11[%c1_39, %c0_40] : memref<18x128xbf16, #tpu.memory_space<vmem>>, vector<16x128xbf16>
    %c128_41 = arith.constant 128 : index
    %c0_42 = arith.constant 0 : index
    %40 = vector.load %arg5[%c128_41, %c0_42] : memref<384x128xbf16, #tpu.memory_space<vmem>>, vector<128x128xbf16>
    %cst_43 = arith.constant dense<0.000000e+00> : vector<16x128xf32>
    %41 = tpu.matmul %39, %40, %cst_43 {dimension_numbers = #tpu.dot_dimension_numbers<[1], [0], [0], [1], [0, 0, 1, 1], [], []>} : vector<16x128xbf16>, vector<128x128xbf16>, vector<16x128xf32> -> vector<16x128xf32>
    %42 = arith.addf %38, %41 : vector<16x128xf32>
    %c2 = arith.constant 2 : index
    %c0_44 = arith.constant 0 : index
    %43 = vector.load %arg11[%c2, %c0_44] : memref<18x128xbf16, #tpu.memory_space<vmem>>, vector<16x128xbf16>
    %c256_45 = arith.constant 256 : index
    %c0_46 = arith.constant 0 : index
    %44 = vector.load %arg5[%c256_45, %c0_46] : memref<384x128xbf16, #tpu.memory_space<vmem>>, vector<128x128xbf16>
    %cst_47 = arith.constant dense<0.000000e+00> : vector<16x128xf32>
    %45 = tpu.matmul %43, %44, %cst_47 {dimension_numbers = #tpu.dot_dimension_numbers<[1], [0], [0], [1], [0, 0, 1, 1], [], []>} : vector<16x128xbf16>, vector<128x128xbf16>, vector<16x128xf32> -> vector<16x128xf32>
    %46 = arith.addf %42, %45 : vector<16x128xf32>
    %c0_48 = arith.constant 0 : index
    %c0_49 = arith.constant 0 : index
    %47 = vector.load %arg8[%c0_48, %c0_49] : memref<1x128xf32, #tpu.memory_space<vmem>>, vector<1x128xf32>
    %48 = vector.broadcast %47 : vector<1x128xf32> to vector<16x128xf32>
    %49 = arith.addf %46, %48 : vector<16x128xf32>
    %cst_50 = arith.constant 0.000000e+00 : f32
    %50 = vector.broadcast %cst_50 : f32 to vector<16x128xf32>
    %51 = arith.maximumf %49, %50 : vector<16x128xf32>
    %52 = arith.truncf %51 : vector<16x128xf32> to vector<16x128xbf16>
    %c0_51 = arith.constant 0 : index
    %c0_52 = arith.constant 0 : index
    %c0_53 = arith.constant 0 : index
    %53 = vector.load %arg9[%c0_51, %c0_52, %c0_53] : memref<1x16x128xbf16, #tpu.memory_space<vmem>>, vector<1x16x128xbf16>
    %54 = vector.shape_cast %53 : vector<1x16x128xbf16> to vector<16x128xbf16>
    %55 = vector.shape_cast %52 : vector<16x128xbf16> to vector<1x16x128xbf16>
    tpu.vector_store %arg9[%c0_51, %c0_52, %c0_53], %55 {strides = array<i32>} : memref<1x16x128xbf16, #tpu.memory_space<vmem>>, vector<1x16x128xbf16>,
    return
  }
  func.func @transform_0(%arg0: i32, %arg1: i32) -> (i32, i32, i32) {
    %c0_i32 = arith.constant 0 : i32
    %c0_i32_0 = arith.constant 0 : i32
    return %arg0, %arg1, %c0_i32 : i32, i32, i32
  }
  func.func @transform_1(%arg0: i32, %arg1: i32) -> (i32, i32, i32, i32) {
    %c0_i32 = arith.constant 0 : i32
    %c0_i32_0 = arith.constant 0 : i32
    %c0_i32_1 = arith.constant 0 : i32
    return %arg0, %arg1, %c0_i32, %c0_i32_0 : i32, i32, i32, i32
  }
  func.func @transform_2(%arg0: i32, %arg1: i32) -> (i32, i32) {
    %c0_i32 = arith.constant 0 : i32
    %c0_i32_0 = arith.constant 0 : i32
    %c0_i32_1 = arith.constant 0 : i32
    return %c0_i32, %c0_i32_0 : i32, i32
  }
  func.func @transform_3(%arg0: i32, %arg1: i32) -> (i32, i32) {
    %c0_i32 = arith.constant 0 : i32
    %c0_i32_0 = arith.constant 0 : i32
    %c0_i32_1 = arith.constant 0 : i32
    return %c0_i32, %c0_i32_0 : i32, i32
  }
  func.func @transform_4(%arg0: i32, %arg1: i32) -> (i32, i32) {
    %c0_i32 = arith.constant 0 : i32
    %c0_i32_0 = arith.constant 0 : i32
    %c0_i32_1 = arith.constant 0 : i32
    return %c0_i32, %c0_i32_0 : i32, i32
  }
  func.func @transform_5(%arg0: i32, %arg1: i32) -> (i32, i32) {
    %c0_i32 = arith.constant 0 : i32
    %c0_i32_0 = arith.constant 0 : i32
    %c0_i32_1 = arith.constant 0 : i32
    return %c0_i32, %c0_i32_0 : i32, i32
  }
  func.func @transform_6(%arg0: i32, %arg1: i32) -> (i32, i32) {
    %c0_i32 = arith.constant 0 : i32
    %c0_i32_0 = arith.constant 0 : i32
    %c0_i32_1 = arith.constant 0 : i32
    return %c0_i32, %c0_i32_0 : i32, i32
  }
  func.func @transform_7(%arg0: i32, %arg1: i32) -> (i32, i32, i32) {
    %c0_i32 = arith.constant 0 : i32
    %c0_i32_0 = arith.constant 0 : i32
    return %arg0, %arg1, %c0_i32 : i32, i32, i32
  }
}

module attributes {stable_mosaic.version = 11 : i64} {
  func.func @kernel(%arg0: i32, %arg1: i32, %arg2: memref<1x16x256xbf16, #tpu.memory_space<vmem>>, %arg3: memref<1x1x16x256xbf16, #tpu.memory_space<vmem>>, %arg4: memref<384x128xbf16, #tpu.memory_space<vmem>>, %arg5: memref<384x128xbf16, #tpu.memory_space<vmem>>, %arg6: memref<128x128xbf16, #tpu.memory_space<vmem>>, %arg7: memref<1x128xf32, #tpu.memory_space<vmem>>, %arg8: memref<1x128xf32, #tpu.memory_space<vmem>>, %arg9: memref<1x16x128xbf16, #tpu.memory_space<vmem>>, %arg10: memref<32x256xbf16, #tpu.memory_space<vmem>>, %arg11: memref<18x128xbf16, #tpu.memory_space<vmem>>) attributes {dimension_semantics = [#tpu.dimension_semantics<parallel>, #tpu.dimension_semantics<parallel>], iteration_bounds = array<i64: 2, 1>, scalar_prefetch = 0 : i64, scratch_operands = 2 : i64, tpu.core_type = #tpu.core_type<tc>, window_params = [{transform_indices = @transform_0, window_bounds = array<i64: 1, 16, 256>}, {transform_indices = @transform_1, window_bounds = array<i64: 1, 1, 16, 256>}, {pipeline_mode = #tpu.pipeline_mode<synchronous>, transform_indices = @transform_2, window_bounds = array<i64: 384, 128>}, {pipeline_mode = #tpu.pipeline_mode<synchronous>, transform_indices = @transform_3, window_bounds = array<i64: 384, 128>}, {pipeline_mode = #tpu.pipeline_mode<synchronous>, transform_indices = @transform_4, window_bounds = array<i64: 128, 128>}, {pipeline_mode = #tpu.pipeline_mode<synchronous>, transform_indices = @transform_5, window_bounds = array<i64: 1, 128>}, {pipeline_mode = #tpu.pipeline_mode<synchronous>, transform_indices = @transform_6, window_bounds = array<i64: 1, 128>}, {transform_indices = @transform_7, window_bounds = array<i64: 1, 16, 128>}]} {
    %c0 = arith.constant 0 : index
    %c0_0 = arith.constant 0 : index
    %c0_1 = arith.constant 0 : index
    %0 = vector.load %arg2[%c0, %c0_0, %c0_1] : memref<1x16x256xbf16, #tpu.memory_space<vmem>>, vector<1x16x256xbf16>
    %1 = vector.shape_cast %0 : vector<1x16x256xbf16> to vector<16x256xbf16>
    %c0_2 = arith.constant 0 : index
    %c0_3 = arith.constant 0 : index
    %2 = vector.load %arg10[%c0_2, %c0_3] : memref<32x256xbf16, #tpu.memory_space<vmem>>, vector<16x256xbf16>
    tpu.vector_store %arg10[%c0_2, %c0_3], %1 {strides = array<i32>} : memref<32x256xbf16, #tpu.memory_space<vmem>>, vector<16x256xbf16>,
    %c0_4 = arith.constant 0 : index
    %c0_5 = arith.constant 0 : index
    %c0_6 = arith.constant 0 : index
    %c0_7 = arith.constant 0 : index
    %3 = vector.load %arg3[%c0_4, %c0_5, %c0_6, %c0_7] : memref<1x1x16x256xbf16, #tpu.memory_space<vmem>>, vector<1x1x16x256xbf16>
    %4 = vector.shape_cast %3 : vector<1x1x16x256xbf16> to vector<16x256xbf16>
    %c16 = arith.constant 16 : index
    %c0_8 = arith.constant 0 : index
    %5 = vector.load %arg10[%c16, %c0_8] : memref<32x256xbf16, #tpu.memory_space<vmem>>, vector<16x256xbf16>
    tpu.vector_store %arg10[%c16, %c0_8], %4 {strides = array<i32>} : memref<32x256xbf16, #tpu.memory_space<vmem>>, vector<16x256xbf16>,
    %cst = arith.constant 0.000000e+00 : f32
    %6 = vector.broadcast %cst : f32 to vector<18x128xf32>
    %c0_9 = arith.constant 0 : index
    %c0_10 = arith.constant 0 : index
    %7 = vector.load %arg10[%c0_9, %c0_10] : memref<32x256xbf16, #tpu.memory_space<vmem>>, vector<18x128xbf16>
    %c0_11 = arith.constant 0 : index
    %c0_12 = arith.constant 0 : index
    %8 = vector.load %arg4[%c0_11, %c0_12] : memref<384x128xbf16, #tpu.memory_space<vmem>>, vector<128x128xbf16>
    %cst_13 = arith.constant dense<0.000000e+00> : vector<18x128xf32>
    %9 = tpu.matmul %7, %8, %cst_13 {dimension_numbers = #tpu.dot_dimension_numbers<[1], [0], [0], [1], [0, 0, 1, 1], [], []>} : vector<18x128xbf16>, vector<128x128xbf16>, vector<18x128xf32> -> vector<18x128xf32>
    %10 = arith.addf %6, %9 : vector<18x128xf32>
    %c0_14 = arith.constant 0 : index
    %c128 = arith.constant 128 : index
    %11 = vector.load %arg10[%c0_14, %c128] : memref<32x256xbf16, #tpu.memory_space<vmem>>, vector<18x128xbf16>
    %c128_15 = arith.constant 128 : index
    %c0_16 = arith.constant 0 : index
    %12 = vector.load %arg4[%c128_15, %c0_16] : memref<384x128xbf16, #tpu.memory_space<vmem>>, vector<128x128xbf16>
    %cst_17 = arith.constant dense<0.000000e+00> : vector<18x128xf32>
    %13 = tpu.matmul %11, %12, %cst_17 {dimension_numbers = #tpu.dot_dimension_numbers<[1], [0], [0], [1], [0, 0, 1, 1], [], []>} : vector<18x128xbf16>, vector<128x128xbf16>, vector<18x128xf32> -> vector<18x128xf32>
    %14 = arith.addf %10, %13 : vector<18x128xf32>
    %c1 = arith.constant 1 : index
    %c0_18 = arith.constant 0 : index
    %15 = vector.load %arg10[%c1, %c0_18] : memref<32x256xbf16, #tpu.memory_space<vmem>>, vector<18x128xbf16>
    %c256 = arith.constant 256 : index
    %c0_19 = arith.constant 0 : index
    %16 = vector.load %arg4[%c256, %c0_19] : memref<384x128xbf16, #tpu.memory_space<vmem>>, vector<128x128xbf16>
    %cst_20 = arith.constant dense<0.000000e+00> : vector<18x128xf32>
    %17 = tpu.matmul %15, %16, %cst_20 {dimension_numbers = #tpu.dot_dimension_numbers<[1], [0], [0], [1], [0, 0, 1, 1], [], []>} : vector<18x128xbf16>, vector<128x128xbf16>, vector<18x128xf32> -> vector<18x128xf32>
    %18 = arith.addf %14, %17 : vector<18x128xf32>
    %c0_21 = arith.constant 0 : index
    %c0_22 = arith.constant 0 : index
    %19 = vector.load %arg7[%c0_21, %c0_22] : memref<1x128xf32, #tpu.memory_space<vmem>>, vector<1x128xf32>
    %20 = vector.broadcast %19 : vector<1x128xf32> to vector<18x128xf32>
    %21 = arith.addf %18, %20 : vector<18x128xf32>
    %cst_23 = arith.constant 0.000000e+00 : f32
    %22 = vector.broadcast %cst_23 : f32 to vector<18x128xf32>
    %23 = arith.maximumf %21, %22 : vector<18x128xf32>
    %24 = arith.truncf %23 : vector<18x128xf32> to vector<18x128xbf16>
    %c0_24 = arith.constant 0 : index
    %c0_25 = arith.constant 0 : index
    %25 = vector.load %arg11[%c0_24, %c0_25] : memref<18x128xbf16, #tpu.memory_space<vmem>>, vector<18x128xbf16>
    tpu.vector_store %arg11[%c0_24, %c0_25], %24 {strides = array<i32>} : memref<18x128xbf16, #tpu.memory_space<vmem>>, vector<18x128xbf16>,
    %c0_i32 = arith.constant 0 : i32
    %26 = arith.cmpi eq, %arg1, %c0_i32 : i32
    %27 = arith.extui %26 : i1 to i32
    %c0_i32_26 = arith.constant 0 : i32
    %28 = arith.cmpi ne, %27, %c0_i32_26 : i32
    scf.if %28 {
      %cst_54 = arith.constant 0.000000e+00 : bf16
      %56 = vector.broadcast %cst_54 : bf16 to vector<1x128xbf16>
      %c0_55 = arith.constant 0 : index
      %c0_56 = arith.constant 0 : index
      %57 = vector.load %arg11[%c0_55, %c0_56] : memref<18x128xbf16, #tpu.memory_space<vmem>>, vector<1x128xbf16>
      tpu.vector_store %arg11[%c0_55, %c0_56], %56 {strides = array<i32>} : memref<18x128xbf16, #tpu.memory_space<vmem>>, vector<1x128xbf16>,
    } else {
    }
    %c0_i32_27 = arith.constant 0 : i32
    %29 = arith.cmpi eq, %arg1, %c0_i32_27 : i32
    %30 = arith.extui %29 : i1 to i32
    %c0_i32_28 = arith.constant 0 : i32
    %31 = arith.cmpi ne, %30, %c0_i32_28 : i32
    scf.if %31 {
      %cst_54 = arith.constant 0.000000e+00 : bf16
      %56 = vector.broadcast %cst_54 : bf16 to vector<1x128xbf16>
      %c9 = arith.constant 9 : index
      %c0_55 = arith.constant 0 : index
      %57 = vector.load %arg11[%c9, %c0_55] : memref<18x128xbf16, #tpu.memory_space<vmem>>, vector<1x128xbf16>
      tpu.vector_store %arg11[%c9, %c0_55], %56 {strides = array<i32>} : memref<18x128xbf16, #tpu.memory_space<vmem>>, vector<1x128xbf16>,
    } else {
    }
    %c1_29 = arith.constant 1 : index
    %c128_30 = arith.constant 128 : index
    %32 = vector.load %arg10[%c1_29, %c128_30] : memref<32x256xbf16, #tpu.memory_space<vmem>>, vector<16x128xbf16>
    %c0_31 = arith.constant 0 : index
    %c0_32 = arith.constant 0 : index
    %33 = vector.load %arg6[%c0_31, %c0_32] : memref<128x128xbf16, #tpu.memory_space<vmem>>, vector<128x128xbf16>
    %cst_33 = arith.constant dense<0.000000e+00> : vector<16x128xf32>
    %34 = tpu.matmul %32, %33, %cst_33 {dimension_numbers = #tpu.dot_dimension_numbers<[1], [0], [0], [1], [0, 0, 1, 1], [], []>} : vector<16x128xbf16>, vector<128x128xbf16>, vector<16x128xf32> -> vector<16x128xf32>
    %c0_34 = arith.constant 0 : index
    %c0_35 = arith.constant 0 : index
    %35 = vector.load %arg11[%c0_34, %c0_35] : memref<18x128xbf16, #tpu.memory_space<vmem>>, vector<16x128xbf16>
    %c0_36 = arith.constant 0 : index
    %c0_37 = arith.constant 0 : index
    %36 = vector.load %arg5[%c0_36, %c0_37] : memref<384x128xbf16, #tpu.memory_space<vmem>>, vector<128x128xbf16>
    %cst_38 = arith.constant dense<0.000000e+00> : vector<16x128xf32>
    %37 = tpu.matmul %35, %36, %cst_38 {dimension_numbers = #tpu.dot_dimension_numbers<[1], [0], [0], [1], [0, 0, 1, 1], [], []>} : vector<16x128xbf16>, vector<128x128xbf16>, vector<16x128xf32> -> vector<16x128xf32>
    %38 = arith.addf %34, %37 : vector<16x128xf32>
    %c1_39 = arith.constant 1 : index
    %c0_40 = arith.constant 0 : index
    %39 = vector.load %arg11[%c1_39, %c0_40] : memref<18x128xbf16, #tpu.memory_space<vmem>>, vector<16x128xbf16>
    %c128_41 = arith.constant 128 : index
    %c0_42 = arith.constant 0 : index
    %40 = vector.load %arg5[%c128_41, %c0_42] : memref<384x128xbf16, #tpu.memory_space<vmem>>, vector<128x128xbf16>
    %cst_43 = arith.constant dense<0.000000e+00> : vector<16x128xf32>
    %41 = tpu.matmul %39, %40, %cst_43 {dimension_numbers = #tpu.dot_dimension_numbers<[1], [0], [0], [1], [0, 0, 1, 1], [], []>} : vector<16x128xbf16>, vector<128x128xbf16>, vector<16x128xf32> -> vector<16x128xf32>
    %42 = arith.addf %38, %41 : vector<16x128xf32>
    %c2 = arith.constant 2 : index
    %c0_44 = arith.constant 0 : index
    %43 = vector.load %arg11[%c2, %c0_44] : memref<18x128xbf16, #tpu.memory_space<vmem>>, vector<16x128xbf16>
    %c256_45 = arith.constant 256 : index
    %c0_46 = arith.constant 0 : index
    %44 = vector.load %arg5[%c256_45, %c0_46] : memref<384x128xbf16, #tpu.memory_space<vmem>>, vector<128x128xbf16>
    %cst_47 = arith.constant dense<0.000000e+00> : vector<16x128xf32>
    %45 = tpu.matmul %43, %44, %cst_47 {dimension_numbers = #tpu.dot_dimension_numbers<[1], [0], [0], [1], [0, 0, 1, 1], [], []>} : vector<16x128xbf16>, vector<128x128xbf16>, vector<16x128xf32> -> vector<16x128xf32>
    %46 = arith.addf %42, %45 : vector<16x128xf32>
    %c0_48 = arith.constant 0 : index
    %c0_49 = arith.constant 0 : index
    %47 = vector.load %arg8[%c0_48, %c0_49] : memref<1x128xf32, #tpu.memory_space<vmem>>, vector<1x128xf32>
    %48 = vector.broadcast %47 : vector<1x128xf32> to vector<16x128xf32>
    %49 = arith.addf %46, %48 : vector<16x128xf32>
    %cst_50 = arith.constant 0.000000e+00 : f32
    %50 = vector.broadcast %cst_50 : f32 to vector<16x128xf32>
    %51 = arith.maximumf %49, %50 : vector<16x128xf32>
    %52 = arith.truncf %51 : vector<16x128xf32> to vector<16x128xbf16>
    %c0_51 = arith.constant 0 : index
    %c0_52 = arith.constant 0 : index
    %c0_53 = arith.constant 0 : index
    %53 = vector.load %arg9[%c0_51, %c0_52, %c0_53] : memref<1x16x128xbf16, #tpu.memory_space<vmem>>, vector<1x16x128xbf16>
    %54 = vector.shape_cast %53 : vector<1x16x128xbf16> to vector<16x128xbf16>
    %55 = vector.shape_cast %52 : vector<16x128xbf16> to vector<1x16x128xbf16>
    tpu.vector_store %arg9[%c0_51, %c0_52, %c0_53], %55 {strides = array<i32>} : memref<1x16x128xbf16, #tpu.memory_space<vmem>>, vector<1x16x128xbf16>,
    return
  }
  func.func @transform_0(%arg0: i32, %arg1: i32) -> (i32, i32, i32) {
    %c0_i32 = arith.constant 0 : i32
    %c0_i32_0 = arith.constant 0 : i32
    return %arg0, %arg1, %c0_i32 : i32, i32, i32
  }
  func.func @transform_1(%arg0: i32, %arg1: i32) -> (i32, i32, i32, i32) {
    %c0_i32 = arith.constant 0 : i32
    %c0_i32_0 = arith.constant 0 : i32
    %c0_i32_1 = arith.constant 0 : i32
    return %arg0, %arg1, %c0_i32, %c0_i32_0 : i32, i32, i32, i32
  }
  func.func @transform_2(%arg0: i32, %arg1: i32) -> (i32, i32) {
    %c0_i32 = arith.constant 0 : i32
    %c0_i32_0 = arith.constant 0 : i32
    %c0_i32_1 = arith.constant 0 : i32
    return %c0_i32, %c0_i32_0 : i32, i32
  }
  func.func @transform_3(%arg0: i32, %arg1: i32) -> (i32, i32) {
    %c0_i32 = arith.constant 0 : i32
    %c0_i32_0 = arith.constant 0 : i32
    %c0_i32_1 = arith.constant 0 : i32
    return %c0_i32, %c0_i32_0 : i32, i32
  }
  func.func @transform_4(%arg0: i32, %arg1: i32) -> (i32, i32) {
    %c0_i32 = arith.constant 0 : i32
    %c0_i32_0 = arith.constant 0 : i32
    %c0_i32_1 = arith.constant 0 : i32
    return %c0_i32, %c0_i32_0 : i32, i32
  }
  func.func @transform_5(%arg0: i32, %arg1: i32) -> (i32, i32) {
    %c0_i32 = arith.constant 0 : i32
    %c0_i32_0 = arith.constant 0 : i32
    %c0_i32_1 = arith.constant 0 : i32
    return %c0_i32, %c0_i32_0 : i32, i32
  }
  func.func @transform_6(%arg0: i32, %arg1: i32) -> (i32, i32) {
    %c0_i32 = arith.constant 0 : i32
    %c0_i32_0 = arith.constant 0 : i32
    %c0_i32_1 = arith.constant 0 : i32
    return %c0_i32, %c0_i32_0 : i32, i32
  }
  func.func @transform_7(%arg0: i32, %arg1: i32) -> (i32, i32, i32) {
    %c0_i32 = arith.constant 0 : i32
    %c0_i32_0 = arith.constant 0 : i32
    return %arg0, %arg1, %c0_i32 : i32, i32, i32
  }
}

</mosaic_0001>

<bundles_post_ra>
// kernel: _lambda_.1
= control target key start
LH: loop header
LB: loop body
LE: loop exit
PB: predicated region body
PF: predicated region fallthrough
CT: control target
= control target key end

     0   :  { %s1868_s24 = smov 0   ;;  %s1870_s25 = smov 0   ;;  %s2131_s0 = inlined_call_operand.vmem [shape: bf16[2,32,256], index: 0, kind: input, shape index: {}]   ;;  %s2132_s1 = inlined_call_operand.vmem [shape: bf16[2,1,16,256], index: 1, kind: input, shape index: {}]   ;;  %s2133_s2 = inlined_call_operand.vmem [shape: bf16[384,128], index: 2, kind: input, shape index: {}]   ;;  %s2134_s3 = inlined_call_operand.vmem [shape: bf16[384,128], index: 3, kind: input, shape index: {}]   ;;  %s2135_s4 = inlined_call_operand.vmem [shape: bf16[128,128], index: 4, kind: input, shape index: {}]   ;;  %s2136_s5 = inlined_call_operand.vmem [shape: f32[1,128], index: 5, kind: input, shape index: {}]   ;;  %s2137_s6 = inlined_call_operand.vmem [shape: f32[1,128], index: 6, kind: input, shape index: {}]   ;;  %s2138_s7 = inlined_call_operand.vmem [shape: bf16[2,16,128], index: 7, kind: output, shape index: {}]  }
   0x1   :  { %s1872_s26 = smov 0  }
   0x2 LB: > { %s29_s27 = sadd.s32 1, %s1820_s25  ;;  %p1406_p0 = scmp.ge.s32.totalorder %s1824_s26, 1  ;;  %s1824_s26 = sphi %s1872_s26, %s17_s26   ;;  %s1820_s25 = sphi %s1870_s25, %s2140_s25   ;;  %s1816_s24 = sphi %s1868_s24, %s2139_s24  }
   0x3   : > { %p31_p1 = scmp.ge.s32.totalorder %s29_s27, 2  ;;  %p275_p2 = scmp.lt.s32.totalorder %s1824_s26, 3 }
   0x5   : > { %s2142_s27 = smov (%p31_p1, %s29_s27), 0  ;;  %p276_p3 = pnand %p1406_p0, %p275_p2 }
   0x6   : > { %v1736_v0 = vld [vmem:[%s2133_s2 + $0x40] sm:$0xff] (!%p276_p3)   ;;  %v1738_v2 = vld [vmem:[%s2133_s2 + $0x48] sm:$0xff] (!%p276_p3)   ;;  %v1740_v4 = vld [vmem:[%s2133_s2 + $0x50] sm:$0xff] (!%p276_p3)   ;;  %p326_p4 = scmp.lt.s32.totalorder (!%p276_p3), %s1816_s24, 1  ;;  %vm629_vm0 = vsmask.f32 (!%p276_p3), 7424 }
   0x7   : > { %279 = sbr.rel (%p276_p3) target bundleno = 568 (0x238), region = 48  ;;  %v1737_v1 = vld [vmem:[%s2133_s2] sm:$0xff] (!%p276_p3)   ;;  %1570 = vmatprep.subr.bf16.mxu0 (!%p276_p3), %v1736_v0  ;;  %v1739_v3 = vld [vmem:[%s2133_s2 + $0x8] sm:$0xff] (!%p276_p3)   ;;  %v1741_v5 = vld [vmem:[%s2133_s2 + $0x10] sm:$0xff] (!%p276_p3)   ;;  %v1826_v41 = vmov (!%p276_p3), 0.0   ;;  %vm1827_vm1 = vmmov (!%p276_p3), 0  }
   0x8   : > { %1590 = vmatprep.subr.bf16.mxu1 (!%p276_p3), %v1737_v1  ;;  %1571 = vmatpush3.bf16.msra.mxu0 (!%p276_p3), %v1736_v0  ;;  %v1742_v6 = vld [vmem:[%s2133_s2 + $0x58] sm:$0xff] (!%p276_p3)   ;;  %v1744_v8 = vld [vmem:[%s2133_s2 + $0x60] sm:$0xff] (!%p276_p3)   ;;  %v1746_v10 = vld [vmem:[%s2133_s2 + $0x68] sm:$0xff] (!%p276_p3)   ;;  %vm779_vm2 = vcmask (!%p276_p3), 1040384   ;;  %vm780_vm3 = vsmask.f32 (!%p276_p3), 256 }
   0x9   : > { %1591 = vmatpush3.bf16.msra.mxu1 (!%p276_p3), %v1737_v1  ;;  %1572 = vmatprep.subr.bf16.mxu0 (!%p276_p3), %v1738_v2  ;;  %v1743_v7 = vld [vmem:[%s2133_s2 + $0x18] sm:$0xff] (!%p276_p3)   ;;  %v1745_v9 = vld [vmem:[%s2133_s2 + $0x20] sm:$0xff] (!%p276_p3)   ;;  %v1747_v11 = vld [vmem:[%s2133_s2 + $0x28] sm:$0xff] (!%p276_p3)   ;;  %vm785_vm4 = vsmask.f32 (!%p276_p3), 7938  ;;  %vm1174_vm7 = vcmask (!%p276_p3), 1046528  }
   0xa   : > { %1592 = vmatprep.subr.bf16.mxu1 (!%p276_p3), %v1739_v3  ;;  %v1748_v16 = vld [vmem:[%s2133_s2 + $0x70] sm:$0xff] (!%p276_p3)   ;;  %v1750_v19 = vld [vmem:[%s2133_s2 + $0x78] sm:$0xff] (!%p276_p3)   ;;  %v1758_v24 = vld [vmem:[%s2133_s2 + $0x80] sm:$0xff] (!%p276_p3)  }
   0xb   : > { %v1749_v17 = vld [vmem:[%s2133_s2 + $0x30] sm:$0xff] (!%p276_p3)   ;;  %v1751_v20 = vld [vmem:[%s2133_s2 + $0x38] sm:$0xff] (!%p276_p3)   ;;  %v1759_v29 = vld [vmem:[%s2133_s2 + $0x88] sm:$0xff] (!%p276_p3)  }
   0xc   : > { %1573 = vmatpush3.bf16.msra.mxu0 (!%p276_p3), %v1738_v2  ;;  %v1760_v32 = vld [vmem:[%s2133_s2 + $0x90] sm:$0xff] (!%p276_p3)   ;;  %v1761_v33 = vld [vmem:[%s2133_s2 + $0x98] sm:$0xff] (!%p276_p3)   ;;  %v1762_v34 = vld [vmem:[%s2133_s2 + $0xa0] sm:$0xff] (!%p276_p3)  }
   0xd   : > { %1593 = vmatpush3.bf16.msra.mxu1 (!%p276_p3), %v1739_v3  ;;  %1574 = vmatprep.subr.bf16.mxu0 (!%p276_p3), %v1740_v4  ;;  %v1763_v35 = vld [vmem:[%s2133_s2 + $0xa8] sm:$0xff] (!%p276_p3)   ;;  %v1764_v36 = vld [vmem:[%s2133_s2 + $0xb0] sm:$0xff] (!%p276_p3)   ;;  %v1765_v37 = vld [vmem:[%s2133_s2 + $0xb8] sm:$0xff] (!%p276_p3)  }
   0xe   : > { %s2144_s24 = smov (!%p326_p4, %s1816_s24), 1  ;;  %1594 = vmatprep.subr.bf16.mxu1 %v1741_v5  ;;  %v1766_v40 = vld [vmem:[%s2135_s4] sm:$0xff]   ;;  %v1767_v42 = vld [vmem:[%s2135_s4 + $0x8] sm:$0xff]   ;;  %v1768_v44 = vld [vmem:[%s2135_s4 + $0x10] sm:$0xff]  }
   0xf   : > { %s1486_s21 = sshll.u32 %s2144_s24, 5  ;;  %s1487_s28 = sshll.u32 %s2144_s24, 4  ;;  %v1773_v43 = vld [vmem:[%s2134_s3] sm:$0xff]   ;;  %v1769_v45 = vld [vmem:[%s2135_s4 + $0x18] sm:$0xff]   ;;  %v1771_v47 = vld [vmem:[%s2135_s4 + $0x28] sm:$0xff]  }
  0x10   : > { %1575 = vmatpush3.bf16.msra.mxu0 %v1740_v4  ;;  %s334_s10 = scalar_lea.vmem %s2131_s0, %s1486_s21  ;;  %s344_s17 = scalar_lea.vmem %s2132_s1, %s1487_s28  ;;  %v1770_v46 = vld [vmem:[%s2135_s4 + $0x20] sm:$0xff]   ;;  %v1772_v48 = vld [vmem:[%s2135_s4 + $0x30] sm:$0xff]   ;;  %v1774_v49 = vld [vmem:[%s2135_s4 + $0x38] sm:$0xff]  }
  0x11   : > { %1595 = vmatpush3.bf16.msra.mxu1 %v1741_v5  ;;  %1576 = vmatprep.subr.bf16.mxu0 %v1742_v6  ;;  %v1932_v12 = vld [vmem:[%s334_s10 + $0x4] ss:$8 sps:$4 sm:$0xff]   ;;  %v1754_v13 = vld [vmem:[%s334_s10] ss:$8 sps:$4 sm:$0xff]   ;;  %v1777_v60 = vld [vmem:[%s2134_s3 + $0x10] sm:$0xff]   ;;  %s1488_s15 = sshll.u32 %s2144_s24, 3 }
  0x12   : > { %1596 = vmatprep.subr.bf16.mxu1 %v1743_v7  ;;  %1586 = vmatprep.mubr.bf16.mxu0 %v1932_v12  ;;  %v1755_v14 = vld [vmem:[%s344_s17 + $0x4] ss:$8 sps:$4 sm:$0xff]   ;;  %v1757_v15 = vld [vmem:[%s344_s17] ss:$8 sps:$4 sm:$0xff]   ;;  %v633_v18 = vshll.u32 %v1754_v13, 16  ;;  %v631_v21 = vshrl.u32 %v1754_v13, 16  ;;  %vm781_vm5 = vmand %vm779_vm2, %vm780_vm3  ;;  %s353_s18 = scalar_lea.vmem %s2138_s7, %s1488_s15 }
  0x13   : > { %1606 = vmatprep.mubr.bf16.mxu1 %v1754_v13  ;;  %383 = vst [vmem:[#allocation2 + $0x18] sm:$0xff] %v1755_v14  ;;  %382 = vst [vmem:[#allocation2 + $0x10] sm:$0xff] %v1757_v15  ;;  %v924_v50 = vshll.u32 %v1932_v12, 16  ;;  %v922_v52 = vshrl.u32 %v1932_v12, 16  ;;  %v1775_v55 = vld [vmem:[%s2134_s3 + $0x8] sm:$0xff]   ;;  %v1776_v58 = vld [vmem:[%s2134_s3 + $0x80] sm:$0xff]  }
  0x14   : > { %1577 = vmatpush3.bf16.msra.mxu0 %v1742_v6  ;;  %v635_v22 = vrot.slane %v633_v18, 1  ;;  %v1778_v61 = vld [vmem:[%s2134_s3 + $0x88] sm:$0xff]   ;;  %v1779_v62 = vld [vmem:[%s2134_s3 + $0x18] sm:$0xff]   ;;  %v1780_v63 = vld [vmem:[%s2134_s3 + $0x90] sm:$0xff]  }
  0x15   : > { %1597 = vmatpush3.bf16.msra.mxu1 %v1743_v7  ;;  %1578 = vmatprep.subr.bf16.mxu0 %v1744_v8  ;;  %v926_v53 = vrot.slane %v924_v50, 1  ;;  %v1781_v0 = vld [vmem:[%s2134_s3 + $0x20] sm:$0xff]   ;;  %v1782_v1 = vld [vmem:[%s2134_s3 + $0x98] sm:$0xff]   ;;  %v1783_v2 = vld [vmem:[%s2134_s3 + $0x28] sm:$0xff]  }
  0x16   : > { %1598 = vmatprep.subr.bf16.mxu1 %v1745_v9  ;;  %v636_v26 = vor.u32 %v635_v22, %v631_v21  ;;  %v1784_v3 = vld [vmem:[%s2134_s3 + $0xa0] sm:$0xff]   ;;  %v1785_v4 = vld [vmem:[%s2134_s3 + $0x30] sm:$0xff]   ;;  %v1786_v5 = vld [vmem:[%s2134_s3 + $0xa8] sm:$0xff]  }
  0x17   : > { %v927_v56 = vor.u32 %v926_v53, %v922_v52  ;;  %v1787_v6 = vld [vmem:[%s2134_s3 + $0x38] sm:$0xff]   ;;  %v1788_v7 = vld [vmem:[%s2134_s3 + $0xb0] sm:$0xff]   ;;  %v1441_v21 = vld [vmem:[%s2136_s5] ss:$0 sm:$0xff] }
  0x18   : > { %1579 = vmatpush3.bf16.msra.mxu0 %v1744_v8  ;;  %v1791_v8 = vld [vmem:[%s2134_s3 + $0xb8] sm:$0xff]   ;;  %vm786_vm6 = vmand %vm779_vm2, %vm785_vm4 }
  0x19   : > { %1599 = vmatpush3.bf16.msra.mxu1 %v1745_v9  ;;  %1580 = vmatprep.subr.bf16.mxu0 %v1746_v10  ;;  %v1797_v52 = vld [vmem:[%s2134_s3 + $0x58] sm:$0xff]  }
  0x1a   : > { %1600 = vmatprep.subr.bf16.mxu1 %v1747_v11  ;;  %v612_v23 = vld [vmem:[#allocation2 + $0x10] sm:$0x3]  ;;  %v403_v27 = vld [vmem:[#allocation2 + $0x18] sm:$0x1] }
  0x1b   : > { %v638_v25 = vshll.u32 %v612_v23, 16  ;;  %v385_v28 = vld [vmem:[#allocation2 + $0x10] sm:$0x1]  ;;  %v642_v38 = vshrl.u32 %v612_v23, 16  ;;  %v791_v51 = vld [vmem:[#allocation2 + $0x18] sm:$0x1] }
  0x1c   : > { %1581 = vmatpush3.bf16.msra.mxu0 %v1746_v10  ;;  %v929_v54 = vshll.u32 %v791_v51, 16  ;;  %v1796_v51 = vld [vmem:[%s2134_s3 + $0x50] sm:$0xff]  }
  0x1d   : > { %1601 = vmatpush3.bf16.msra.mxu1 %v1747_v11  ;;  %1582 = vmatprep.subr.bf16.mxu0 %v1748_v16  ;;  %v640_v30 = vrot.slane %v638_v25, 1 }
  0x1e   : > { %1602 = vmatprep.subr.bf16.mxu1 %v1749_v17  ;;  %v931_v57 = vrot.slane %v929_v54, 1  ;;  %v1798_v54 = vld [vmem:[%s2134_s3 + $0x60] sm:$0xff]  }
  0x1f   : > { %v641_v31 = vsel %vm629_vm0, %v636_v26, %v640_v30  ;;  %v644_v39 = vor.u32 %v642_v38, %v640_v30 }
  0x20   : > { %1583 = vmatpush3.bf16.msra.mxu0 %v1748_v16  ;;  %v932_v59 = vsel %vm629_vm0, %v927_v56, %v931_v57  ;;  %v1799_v56 = vld [vmem:[%s2134_s3 + $0x68] sm:$0xff]  }
  0x21   : > { %1603 = vmatpush3.bf16.msra.mxu1 %v1749_v17  ;;  %1584 = vmatprep.subr.bf16.mxu0 %v1750_v19 }
  0x22   : > { %1604 = vmatprep.subr.bf16.mxu1 %v1751_v20 }
  0x24   : > { %1585 = vmatpush3.bf16.msra.mxu0 %v1750_v19 }
  0x25   : > { %1605 = vmatpush3.bf16.msra.mxu1 %v1751_v20  ;;  %1610 = vmatprep.subr.bf16.mxu0 %v1758_v24 }
  0x26   : > { %1630 = vmatprep.subr.bf16.mxu1 %v1826_v41 }
  0x27   : > { %1587 = vmatmul.mubr.bf16.vlgmr.msra.gmra.mrb[0].mxu0 %v403_v27 }
  0x28   : > { %1607 = vmatmul.mubr.bf16.vlgmr.msra.gmra.mrb[0].mxu1 %v385_v28  ;;  %1611 = vmatpush3.bf16.msra.mxu0 %v1758_v24 }
  0x29   : > { %1612 = vmatprep.subr.bf16.mxu0 %v1759_v29  ;;  %1626 = vmatprep.mubr.bf16.mxu0 %v641_v31 }
  0x2a   : > { %1631 = vmatpush3.bf16.msra.mxu1 %v1773_v43  ;;  %1646 = vmatprep.mubr.msk.bf16.mxu1 %vm1827_vm1, %v1826_v41 }
  0x2b   : > { %1632 = vmatprep.subr.bf16.mxu1 %v1826_v41 }
  0x2c   : > { %1613 = vmatpush3.bf16.msra.mxu0 %v1759_v29 }
  0x2d   : > { %1614 = vmatprep.subr.bf16.mxu0 %v1760_v32 }
  0x2e   : > { %1633 = vmatpush3.bf16.msra.mxu1 %v1775_v55 }
  0x2f   : > { %1634 = vmatprep.subr.bf16.mxu1 %v1826_v41 }
  0x30   : > { %1615 = vmatpush3.bf16.msra.mxu0 %v1760_v32 }
  0x31   : > { %1616 = vmatprep.subr.bf16.mxu0 %v1761_v33 }
  0x32   : > { %1635 = vmatpush3.bf16.msra.mxu1 %v1777_v60  ;;  %v1801_v60 = vld [vmem:[%s2134_s3 + $0x78] sm:$0xff]  }
  0x33   : > { %1636 = vmatprep.subr.bf16.mxu1 %v1826_v41 }
  0x34   : > { %1617 = vmatpush3.bf16.msra.mxu0 %v1761_v33 }
  0x35   : > { %1618 = vmatprep.subr.bf16.mxu0 %v1762_v34 }
  0x36   : > { %1637 = vmatpush3.bf16.msra.mxu1 %v1779_v62 }
  0x37   : > { %1638 = vmatprep.subr.bf16.mxu1 %v1826_v41 }
  0x38   : > { %1619 = vmatpush3.bf16.msra.mxu0 %v1762_v34 }
  0x39   : > { %1620 = vmatprep.subr.bf16.mxu0 %v1763_v35 }
  0x3a   : > { %1639 = vmatpush3.bf16.msra.mxu1 %v1781_v0 }
  0x3b   : > { %1640 = vmatprep.subr.bf16.mxu1 %v1826_v41 }
  0x3c   : > { %1621 = vmatpush3.bf16.msra.mxu0 %v1763_v35 }
  0x3d   : > { %1622 = vmatprep.subr.bf16.mxu0 %v1764_v36 }
  0x3e   : > { %1641 = vmatpush3.bf16.msra.mxu1 %v1783_v2 }
  0x3f   : > { %1642 = vmatprep.subr.bf16.mxu1 %v1826_v41 }
  0x40   : > { %1623 = vmatpush3.bf16.msra.mxu0 %v1764_v36 }
  0x41   : > { %1624 = vmatprep.subr.bf16.mxu0 %v1765_v37 }
  0x42   : > { %1643 = vmatpush3.bf16.msra.mxu1 %v1785_v4 }
  0x43   : > { %1644 = vmatprep.subr.bf16.mxu1 %v1826_v41 }
  0x44   : > { %1625 = vmatpush3.bf16.msra.mxu0 %v1765_v37 }
  0x45   : > { %1650 = vmatprep.subr.bf16.mxu0 %v1826_v41 }
  0x46   : > { %1645 = vmatpush3.bf16.msra.mxu1 %v1787_v6 }
  0x47   : > { %1627 = vmatmul.mubr.bf16.vlgmr.msra.gmra.mrb[4].mxu0 %v644_v39  ;;  %1670 = vmatprep.subr.bf16.mxu1 %v1826_v41 }
  0x48   : > { %1651 = vmatpush3.bf16.msra.mxu0 %v1766_v40  ;;  %1666 = vmatprep.mubr.msk.bf16.mxu0 %vm1827_vm1, %v1826_v41  ;;  %v1790_v40 = vld [vmem:[%s2134_s3 + $0x40] sm:$0xff]  }
  0x49   : > { %1652 = vmatprep.subr.bf16.mxu0 %v1826_v41 }
  0x4c   : > { %1653 = vmatpush3.bf16.msra.mxu0 %v1767_v42 }
  0x4d   : > { %1654 = vmatprep.subr.bf16.mxu0 %v1826_v41 }
  0x50   : > { %1655 = vmatpush3.bf16.msra.mxu0 %v1768_v44 }
  0x51   : > { %1656 = vmatprep.subr.bf16.mxu0 %v1826_v41 }
  0x54   : > { %1657 = vmatpush3.bf16.msra.mxu0 %v1769_v45 }
  0x55   : > { %1658 = vmatprep.subr.bf16.mxu0 %v1826_v41 }
  0x58   : > { %1659 = vmatpush3.bf16.msra.mxu0 %v1770_v46 }
  0x59   : > { %1660 = vmatprep.subr.bf16.mxu0 %v1826_v41 }
  0x5c   : > { %1661 = vmatpush3.bf16.msra.mxu0 %v1771_v47  ;;  %v1795_v47 = vld [vmem:[%s2134_s3 + $0x48] sm:$0xff]  }
  0x5d   : > { %1662 = vmatprep.subr.bf16.mxu0 %v1826_v41 }
  0x60   : > { %1663 = vmatpush3.bf16.msra.mxu0 %v1772_v48 }
  0x61   : > { %1664 = vmatprep.subr.bf16.mxu0 %v1826_v41 }
  0x64   : > { %1665 = vmatpush3.bf16.msra.mxu0 %v1774_v49 }
  0x65   : > { %1690 = vmatprep.subr.bf16.mxu0 %v1826_v41 }
  0x67   : > { %1667 = vmatmul.mubr.bf16.vlgmr.msra.gmra.mrb[8].mxu0 %v932_v59 }
  0x68   : > { %1691 = vmatpush3.bf16.msra.mxu0 %v1776_v58  ;;  %1706 = vmatprep.mubr.msk.bf16.mxu0 %vm1827_vm1, %v1826_v41  ;;  %v1800_v58 = vld [vmem:[%s2134_s3 + $0x70] sm:$0xff]  }
  0x69   : > { %1692 = vmatprep.subr.bf16.mxu0 %v1826_v41 }
  0x6c   : > { %1693 = vmatpush3.bf16.msra.mxu0 %v1778_v61 }
  0x6d   : > { %1694 = vmatprep.subr.bf16.mxu0 %v1826_v41 }
  0x70   : > { %1695 = vmatpush3.bf16.msra.mxu0 %v1780_v63 }
  0x71   : > { %1696 = vmatprep.subr.bf16.mxu0 %v1826_v41 }
  0x74   : > { %1697 = vmatpush3.bf16.msra.mxu0 %v1782_v1 }
  0x75   : > { %1698 = vmatprep.subr.bf16.mxu0 %v1826_v41 }
  0x78   : > { %1699 = vmatpush3.bf16.msra.mxu0 %v1784_v3 }
  0x79   : > { %1700 = vmatprep.subr.bf16.mxu0 %v1826_v41 }
  0x7c   : > { %1701 = vmatpush3.bf16.msra.mxu0 %v1786_v5 }
  0x7d   : > { %1702 = vmatprep.subr.bf16.mxu0 %v1826_v41 }
  0x80   : > { %1703 = vmatpush3.bf16.msra.mxu0 %v1788_v7 }
  0x81   : > { %1704 = vmatprep.subr.bf16.mxu0 %v1826_v41 }
  0x84   : > { %1705 = vmatpush3.bf16.msra.mxu0 %v1791_v8 }
  0xfa   : > { %v1588_v9 = vpop.f32.mrb[0].mxu0 }
  0xfb   : > { %v1608_v10 = vpop.f32.mrb[0].mxu1  ;;  %v502_v11 = vpop.f32.mrb[1].mxu0 }
  0xfc   : > { %v607_v12 = vadd.f32 %v1608_v10, %v1588_v9  ;;  %v598_v13 = vpop.f32.mrb[1].mxu1  ;;  %v1589_v14 = vpop.f32.mrb[2].mxu0 }
  0xfd   : > { %v599_v15 = vadd.f32 %v598_v13, %v502_v11  ;;  %v1609_v16 = vpop.f32.mrb[2].mxu1  ;;  %v505_v17 = vpop.f32.mrb[3].mxu0 }
  0xfe   : > { %v601_v18 = vpop.f32.mrb[3].mxu1 }
  0xff   : > { %v602_v19 = vadd.f32 %v601_v18, %v505_v17  ;;  %v1481_v18 = vld [vmem:[%s2137_s6] ss:$0 sm:$0xff] }
 0x11a   : > { %v1628_v20 = vpop.f32.mrb[4].mxu0 }
 0x11b   : > { %v745_v22 = vadd.f32 %v1628_v20, %v607_v12  ;;  %v729_v23 = vpop.f32.mrb[5].mxu0 }
 0x11c   : > { %v743_v24 = vadd.f32 %v729_v23, %v599_v15  ;;  %v1629_v25 = vpop.f32.mrb[6].mxu0 }
 0x11d   : > { %v755_v26 = vadd.f32 %v1441_v21, %v745_v22  ;;  %v732_v27 = vpop.f32.mrb[7].mxu0 }
 0x11e   : > { %v753_v28 = vadd.f32 %v1441_v21, %v743_v24  ;;  %v744_v29 = vadd.f32 %v732_v27, %v602_v19 }
 0x11f   : > { %v758_v30 = vmax.f32 %v755_v26, 0.0 }
 0x120   : > { %v754_v31 = vadd.f32 %v1441_v21, %v744_v29  ;;  %v756_v33 = vmax.f32 %v753_v28, 0.0 }
 0x121   : > { %v1491_v32 = vpack.c.bf16 %v758_v30, %v758_v30 }
 0x122   : > { %v757_v34 = vmax.f32 %v754_v31, 0.0 }
 0x123   : > { %774 = vst [vmem:[#allocation3 + $0x8] sm:$0x1] %v1491_v32 }
 0x124   : > { %v1497_v35 = vpack.c.bf16 %v757_v34, %v756_v33 }
 0x126   : > { %1498 = vst [vmem:[#allocation3] sm:$0xff] %v1497_v35  }
 0x12a   : > { %v1793_v42 = vld [vmem:[#allocation3 + $0x8] ss:$0 sps:$4 sm:$0x11]  }
 0x12b   : > { %v1176_v49 = vrot.slane %v1793_v42, 1  ;;  %v1058_v62 = vshll.u32 %v1793_v42, 16 }
 0x12d   : > { %v782_v36 = vld [vmem:[#allocation3] sm:$0x1]  ;;  %v787_v37 = vld [vmem:[#allocation3 + $0x4] sm:$0x1]  ;;  %v1154_v45 = vld [vmem:[#allocation3] sm:$0xe] }
 0x12e   : > { %v783_v38 = vsel %vm781_vm5, 0, %v782_v36  ;;  %v788_v39 = vsel %vm786_vm6, 0, %v787_v37  ;;  %v1060_v0 = vrot.slane %v1058_v62, 1 }
 0x12f   : > { %784 = vst [vmem:[#allocation3] sm:$0x1] %v783_v38  ;;  %789 = vst [vmem:[#allocation3 + $0x4] sm:$0x1] %v788_v39 }
 0x136   : > { %v1789_v43 = vld [vmem:[#allocation3] sm:$0xff]  }
 0x137   : > { %v1024_v44 = vld [vmem:[#allocation3 + $0x4] sm:$0xf]  ;;  %1647 = vmatmul.mubr.bf16.vlgmr.msra.gmra.mrb[4].mxu1 %v1789_v43  ;;  %v1023_v53 = vld [vmem:[#allocation3] sm:$0xf] }
 0x138   : > { %v1472_v46 = vcombine.low %v1154_v45, %v1024_v44  ;;  %1671 = vmatpush3.bf16.msra.mxu1 %v1790_v40  ;;  %1686 = vmatprep.mubr.msk.bf16.mxu1 %vm1827_vm1, %v1826_v41  ;;  %v1462_v55 = vcombine.low %v1023_v53, %v1024_v44 }
 0x139   : > { %1672 = vmatprep.subr.bf16.mxu1 %v1826_v41 }
 0x13a   : > { %v1175_v48 = vrot.slane %v1472_v46, 1  ;;  %v1053_v57 = vshll.u32 %v1462_v55, 16  ;;  %v1051_v61 = vshrl.u32 %v1462_v55, 16  ;;  %v1016_v2 = vpop.f32.mrb[8].mxu0 }
 0x13b   : > { %v1668_v3 = vpop.f32.mrb[9].mxu0 }
 0x13c   : > { %v1177_v50 = vsel %vm1174_vm7, %v1175_v48, %v1176_v49  ;;  %1673 = vmatpush3.bf16.msra.mxu1 %v1795_v47  ;;  %v1055_v59 = vrot.slane %v1053_v57, 1  ;;  %v1019_v4 = vpop.f32.mrb[10].mxu0 }
 0x13d   : > { %1707 = vmatmul.mubr.bf16.vlgmr.msra.gmra.mrb[12].mxu0 %v1177_v50  ;;  %1674 = vmatprep.subr.bf16.mxu1 %v1826_v41  ;;  %v1669_v5 = vpop.f32.mrb[11].mxu0 }
 0x13e   : > { %v1056_v63 = vor.u32 %v1055_v59, %v1051_v61 }
 0x140   : > { %1675 = vmatpush3.bf16.msra.mxu1 %v1796_v51  ;;  %v1061_v1 = vsel %vm629_vm0, %v1056_v63, %v1060_v0 }
 0x141   : > { %1676 = vmatprep.subr.bf16.mxu1 %v1826_v41 }
 0x144   : > { %1677 = vmatpush3.bf16.msra.mxu1 %v1797_v52 }
 0x145   : > { %1678 = vmatprep.subr.bf16.mxu1 %v1826_v41 }
 0x148   : > { %1679 = vmatpush3.bf16.msra.mxu1 %v1798_v54 }
 0x149   : > { %1680 = vmatprep.subr.bf16.mxu1 %v1826_v41 }
 0x14c   : > { %1681 = vmatpush3.bf16.msra.mxu1 %v1799_v56 }
 0x14d   : > { %1682 = vmatprep.subr.bf16.mxu1 %v1826_v41 }
 0x150   : > { %1683 = vmatpush3.bf16.msra.mxu1 %v1800_v58 }
 0x151   : > { %1684 = vmatprep.subr.bf16.mxu1 %v1826_v41 }
 0x154   : > { %1685 = vmatpush3.bf16.msra.mxu1 %v1801_v60 }
 0x157   : > { %1687 = vmatmul.mubr.bf16.vlgmr.msra.gmra.mrb[8].mxu1 %v1061_v1 }
 0x20a   : > { %v914_v6 = vpop.f32.mrb[4].mxu1 }
 0x20b   : > { %v1017_v7 = vadd.f32 %v1016_v2, %v914_v6  ;;  %v1648_v8 = vpop.f32.mrb[5].mxu1 }
 0x20c   : > { %v917_v9 = vpop.f32.mrb[6].mxu1 }
 0x20d   : > { %v1020_v10 = vadd.f32 %v1019_v4, %v917_v9  ;;  %v1649_v11 = vpop.f32.mrb[7].mxu1 }
 0x210   : > { %v1261_v12 = vpop.f32.mrb[12].mxu0 }
 0x211   : > { %v1708_v13 = vpop.f32.mrb[13].mxu0 }
 0x212   : > { %v1264_v41 = vpop.f32.mrb[14].mxu0 }
 0x213   : > { %v1709_v14 = vpop.f32.mrb[15].mxu0 }
 0x22a   : > { %v1145_v15 = vpop.f32.mrb[8].mxu1 }
 0x22b   : > { %v1152_v16 = vadd.f32 %v1145_v15, %v1017_v7  ;;  %v1688_v17 = vpop.f32.mrb[9].mxu1 }
 0x22c   : > { %v1148_v19 = vpop.f32.mrb[10].mxu1 }
 0x22d   : > { %v1268_v20 = vadd.f32 %v1261_v12, %v1152_v16  ;;  %v1153_v21 = vadd.f32 %v1148_v19, %v1020_v10  ;;  %v1689_v22 = vpop.f32.mrb[11].mxu1 }
 0x22f   : > { %v1277_v23 = vadd.f32 %v1481_v18, %v1268_v20  ;;  %v1269_v24 = vadd.f32 %v1264_v41, %v1153_v21 }
 0x231   : > { %v1278_v25 = vadd.f32 %v1481_v18, %v1269_v24  ;;  %v1279_v26 = vmax.f32 %v1277_v23, 0.0 }
 0x233   : > { %v1280_v27 = vmax.f32 %v1278_v25, 0.0 }
 0x235   : > { %v1502_v28 = vpack.c.bf16 %v1280_v27, %v1279_v26 }
 0x237   : > { %1503 = vst [vmem:[%s353_s18] sm:$0xff] %v1502_v28  }
 0x238 PF: > { %s17_s26 = sadd.s32 1, %s1824_s26   ;;  %s2139_s24 = smov %s1820_s25 }
 0x239   : > { %p14_p5 = scmp.ge.s32.totalorder %s17_s26, 4   ;;  %s2140_s25 = smov %s2142_s27 }
 0x23b   :  { %16 = sbr.rel (!%p14_p5) target bundleno = 2 (0x2), region = 85 }

// kernel: _lambda_.1
= control target key start
LH: loop header
LB: loop body
LE: loop exit
PB: predicated region body
PF: predicated region fallthrough
CT: control target
= control target key end

     0   :  { %s1868_s24 = smov 0   ;;  %s1870_s25 = smov 0   ;;  %s2131_s0 = inlined_call_operand.vmem [shape: bf16[2,32,256], index: 0, kind: input, shape index: {}]   ;;  %s2132_s1 = inlined_call_operand.vmem [shape: bf16[2,1,16,256], index: 1, kind: input, shape index: {}]   ;;  %s2133_s2 = inlined_call_operand.vmem [shape: bf16[384,128], index: 2, kind: input, shape index: {}]   ;;  %s2134_s3 = inlined_call_operand.vmem [shape: bf16[384,128], index: 3, kind: input, shape index: {}]   ;;  %s2135_s4 = inlined_call_operand.vmem [shape: bf16[128,128], index: 4, kind: input, shape index: {}]   ;;  %s2136_s5 = inlined_call_operand.vmem [shape: f32[1,128], index: 5, kind: input, shape index: {}]   ;;  %s2137_s6 = inlined_call_operand.vmem [shape: f32[1,128], index: 6, kind: input, shape index: {}]   ;;  %s2138_s7 = inlined_call_operand.vmem [shape: bf16[2,16,128], index: 7, kind: output, shape index: {}]  }
   0x1   :  { %s1872_s26 = smov 0  }
   0x2 LB: > { %s29_s27 = sadd.s32 1, %s1820_s25  ;;  %p1406_p0 = scmp.ge.s32.totalorder %s1824_s26, 1  ;;  %s1824_s26 = sphi %s1872_s26, %s17_s26   ;;  %s1820_s25 = sphi %s1870_s25, %s2140_s25   ;;  %s1816_s24 = sphi %s1868_s24, %s2139_s24  }
   0x3   : > { %p31_p1 = scmp.ge.s32.totalorder %s29_s27, 2  ;;  %p275_p2 = scmp.lt.s32.totalorder %s1824_s26, 3 }
   0x5   : > { %s2142_s27 = smov (%p31_p1, %s29_s27), 0  ;;  %p276_p3 = pnand %p1406_p0, %p275_p2 }
   0x6   : > { %v1736_v0 = vld [vmem:[%s2133_s2 + $0x40] sm:$0xff] (!%p276_p3)   ;;  %v1738_v2 = vld [vmem:[%s2133_s2 + $0x48] sm:$0xff] (!%p276_p3)   ;;  %v1740_v4 = vld [vmem:[%s2133_s2 + $0x50] sm:$0xff] (!%p276_p3)   ;;  %p326_p4 = scmp.lt.s32.totalorder (!%p276_p3), %s1816_s24, 1  ;;  %vm629_vm0 = vsmask.f32 (!%p276_p3), 7424 }
   0x7   : > { %279 = sbr.rel (%p276_p3) target bundleno = 568 (0x238), region = 48  ;;  %v1737_v1 = vld [vmem:[%s2133_s2] sm:$0xff] (!%p276_p3)   ;;  %1570 = vmatprep.subr.bf16.mxu0 (!%p276_p3), %v1736_v0  ;;  %v1739_v3 = vld [vmem:[%s2133_s2 + $0x8] sm:$0xff] (!%p276_p3)   ;;  %v1741_v5 = vld [vmem:[%s2133_s2 + $0x10] sm:$0xff] (!%p276_p3)   ;;  %v1826_v41 = vmov (!%p276_p3), 0.0   ;;  %vm1827_vm1 = vmmov (!%p276_p3), 0  }
   0x8   : > { %1590 = vmatprep.subr.bf16.mxu1 (!%p276_p3), %v1737_v1  ;;  %1571 = vmatpush3.bf16.msra.mxu0 (!%p276_p3), %v1736_v0  ;;  %v1742_v6 = vld [vmem:[%s2133_s2 + $0x58] sm:$0xff] (!%p276_p3)   ;;  %v1744_v8 = vld [vmem:[%s2133_s2 + $0x60] sm:$0xff] (!%p276_p3)   ;;  %v1746_v10 = vld [vmem:[%s2133_s2 + $0x68] sm:$0xff] (!%p276_p3)   ;;  %vm779_vm2 = vcmask (!%p276_p3), 1040384   ;;  %vm780_vm3 = vsmask.f32 (!%p276_p3), 256 }
   0x9   : > { %1591 = vmatpush3.bf16.msra.mxu1 (!%p276_p3), %v1737_v1  ;;  %1572 = vmatprep.subr.bf16.mxu0 (!%p276_p3), %v1738_v2  ;;  %v1743_v7 = vld [vmem:[%s2133_s2 + $0x18] sm:$0xff] (!%p276_p3)   ;;  %v1745_v9 = vld [vmem:[%s2133_s2 + $0x20] sm:$0xff] (!%p276_p3)   ;;  %v1747_v11 = vld [vmem:[%s2133_s2 + $0x28] sm:$0xff] (!%p276_p3)   ;;  %vm785_vm4 = vsmask.f32 (!%p276_p3), 7938  ;;  %vm1174_vm7 = vcmask (!%p276_p3), 1046528  }
   0xa   : > { %1592 = vmatprep.subr.bf16.mxu1 (!%p276_p3), %v1739_v3  ;;  %v1748_v16 = vld [vmem:[%s2133_s2 + $0x70] sm:$0xff] (!%p276_p3)   ;;  %v1750_v19 = vld [vmem:[%s2133_s2 + $0x78] sm:$0xff] (!%p276_p3)   ;;  %v1758_v24 = vld [vmem:[%s2133_s2 + $0x80] sm:$0xff] (!%p276_p3)  }
   0xb   : > { %v1749_v17 = vld [vmem:[%s2133_s2 + $0x30] sm:$0xff] (!%p276_p3)   ;;  %v1751_v20 = vld [vmem:[%s2133_s2 + $0x38] sm:$0xff] (!%p276_p3)   ;;  %v1759_v29 = vld [vmem:[%s2133_s2 + $0x88] sm:$0xff] (!%p276_p3)  }
   0xc   : > { %1573 = vmatpush3.bf16.msra.mxu0 (!%p276_p3), %v1738_v2  ;;  %v1760_v32 = vld [vmem:[%s2133_s2 + $0x90] sm:$0xff] (!%p276_p3)   ;;  %v1761_v33 = vld [vmem:[%s2133_s2 + $0x98] sm:$0xff] (!%p276_p3)   ;;  %v1762_v34 = vld [vmem:[%s2133_s2 + $0xa0] sm:$0xff] (!%p276_p3)  }
   0xd   : > { %1593 = vmatpush3.bf16.msra.mxu1 (!%p276_p3), %v1739_v3  ;;  %1574 = vmatprep.subr.bf16.mxu0 (!%p276_p3), %v1740_v4  ;;  %v1763_v35 = vld [vmem:[%s2133_s2 + $0xa8] sm:$0xff] (!%p276_p3)   ;;  %v1764_v36 = vld [vmem:[%s2133_s2 + $0xb0] sm:$0xff] (!%p276_p3)   ;;  %v1765_v37 = vld [vmem:[%s2133_s2 + $0xb8] sm:$0xff] (!%p276_p3)  }
   0xe   : > { %s2144_s24 = smov (!%p326_p4, %s1816_s24), 1  ;;  %1594 = vmatprep.subr.bf16.mxu1 %v1741_v5  ;;  %v1766_v40 = vld [vmem:[%s2135_s4] sm:$0xff]   ;;  %v1767_v42 = vld [vmem:[%s2135_s4 + $0x8] sm:$0xff]   ;;  %v1768_v44 = vld [vmem:[%s2135_s4 + $0x10] sm:$0xff]  }
   0xf   : > { %s1486_s21 = sshll.u32 %s2144_s24, 5  ;;  %s1487_s28 = sshll.u32 %s2144_s24, 4  ;;  %v1773_v43 = vld [vmem:[%s2134_s3] sm:$0xff]   ;;  %v1769_v45 = vld [vmem:[%s2135_s4 + $0x18] sm:$0xff]   ;;  %v1771_v47 = vld [vmem:[%s2135_s4 + $0x28] sm:$0xff]  }
  0x10   : > { %1575 = vmatpush3.bf16.msra.mxu0 %v1740_v4  ;;  %s334_s10 = scalar_lea.vmem %s2131_s0, %s1486_s21  ;;  %s344_s17 = scalar_lea.vmem %s2132_s1, %s1487_s28  ;;  %v1770_v46 = vld [vmem:[%s2135_s4 + $0x20] sm:$0xff]   ;;  %v1772_v48 = vld [vmem:[%s2135_s4 + $0x30] sm:$0xff]   ;;  %v1774_v49 = vld [vmem:[%s2135_s4 + $0x38] sm:$0xff]  }
  0x11   : > { %1595 = vmatpush3.bf16.msra.mxu1 %v1741_v5  ;;  %1576 = vmatprep.subr.bf16.mxu0 %v1742_v6  ;;  %v1932_v12 = vld [vmem:[%s334_s10 + $0x4] ss:$8 sps:$4 sm:$0xff]   ;;  %v1754_v13 = vld [vmem:[%s334_s10] ss:$8 sps:$4 sm:$0xff]   ;;  %v1777_v60 = vld [vmem:[%s2134_s3 + $0x10] sm:$0xff]   ;;  %s1488_s15 = sshll.u32 %s2144_s24, 3 }
  0x12   : > { %1596 = vmatprep.subr.bf16.mxu1 %v1743_v7  ;;  %1586 = vmatprep.mubr.bf16.mxu0 %v1932_v12  ;;  %v1755_v14 = vld [vmem:[%s344_s17 + $0x4] ss:$8 sps:$4 sm:$0xff]   ;;  %v1757_v15 = vld [vmem:[%s344_s17] ss:$8 sps:$4 sm:$0xff]   ;;  %v633_v18 = vshll.u32 %v1754_v13, 16  ;;  %v631_v21 = vshrl.u32 %v1754_v13, 16  ;;  %vm781_vm5 = vmand %vm779_vm2, %vm780_vm3  ;;  %s353_s18 = scalar_lea.vmem %s2138_s7, %s1488_s15 }
  0x13   : > { %1606 = vmatprep.mubr.bf16.mxu1 %v1754_v13  ;;  %383 = vst [vmem:[#allocation2 + $0x18] sm:$0xff] %v1755_v14  ;;  %382 = vst [vmem:[#allocation2 + $0x10] sm:$0xff] %v1757_v15  ;;  %v924_v50 = vshll.u32 %v1932_v12, 16  ;;  %v922_v52 = vshrl.u32 %v1932_v12, 16  ;;  %v1775_v55 = vld [vmem:[%s2134_s3 + $0x8] sm:$0xff]   ;;  %v1776_v58 = vld [vmem:[%s2134_s3 + $0x80] sm:$0xff]  }
  0x14   : > { %1577 = vmatpush3.bf16.msra.mxu0 %v1742_v6  ;;  %v635_v22 = vrot.slane %v633_v18, 1  ;;  %v1778_v61 = vld [vmem:[%s2134_s3 + $0x88] sm:$0xff]   ;;  %v1779_v62 = vld [vmem:[%s2134_s3 + $0x18] sm:$0xff]   ;;  %v1780_v63 = vld [vmem:[%s2134_s3 + $0x90] sm:$0xff]  }
  0x15   : > { %1597 = vmatpush3.bf16.msra.mxu1 %v1743_v7  ;;  %1578 = vmatprep.subr.bf16.mxu0 %v1744_v8  ;;  %v926_v53 = vrot.slane %v924_v50, 1  ;;  %v1781_v0 = vld [vmem:[%s2134_s3 + $0x20] sm:$0xff]   ;;  %v1782_v1 = vld [vmem:[%s2134_s3 + $0x98] sm:$0xff]   ;;  %v1783_v2 = vld [vmem:[%s2134_s3 + $0x28] sm:$0xff]  }
  0x16   : > { %1598 = vmatprep.subr.bf16.mxu1 %v1745_v9  ;;  %v636_v26 = vor.u32 %v635_v22, %v631_v21  ;;  %v1784_v3 = vld [vmem:[%s2134_s3 + $0xa0] sm:$0xff]   ;;  %v1785_v4 = vld [vmem:[%s2134_s3 + $0x30] sm:$0xff]   ;;  %v1786_v5 = vld [vmem:[%s2134_s3 + $0xa8] sm:$0xff]  }
  0x17   : > { %v927_v56 = vor.u32 %v926_v53, %v922_v52  ;;  %v1787_v6 = vld [vmem:[%s2134_s3 + $0x38] sm:$0xff]   ;;  %v1788_v7 = vld [vmem:[%s2134_s3 + $0xb0] sm:$0xff]   ;;  %v1441_v21 = vld [vmem:[%s2136_s5] ss:$0 sm:$0xff] }
  0x18   : > { %1579 = vmatpush3.bf16.msra.mxu0 %v1744_v8  ;;  %v1791_v8 = vld [vmem:[%s2134_s3 + $0xb8] sm:$0xff]   ;;  %vm786_vm6 = vmand %vm779_vm2, %vm785_vm4 }
  0x19   : > { %1599 = vmatpush3.bf16.msra.mxu1 %v1745_v9  ;;  %1580 = vmatprep.subr.bf16.mxu0 %v1746_v10  ;;  %v1797_v52 = vld [vmem:[%s2134_s3 + $0x58] sm:$0xff]  }
  0x1a   : > { %1600 = vmatprep.subr.bf16.mxu1 %v1747_v11  ;;  %v612_v23 = vld [vmem:[#allocation2 + $0x10] sm:$0x3]  ;;  %v403_v27 = vld [vmem:[#allocation2 + $0x18] sm:$0x1] }
  0x1b   : > { %v638_v25 = vshll.u32 %v612_v23, 16  ;;  %v385_v28 = vld [vmem:[#allocation2 + $0x10] sm:$0x1]  ;;  %v642_v38 = vshrl.u32 %v612_v23, 16  ;;  %v791_v51 = vld [vmem:[#allocation2 + $0x18] sm:$0x1] }
  0x1c   : > { %1581 = vmatpush3.bf16.msra.mxu0 %v1746_v10  ;;  %v929_v54 = vshll.u32 %v791_v51, 16  ;;  %v1796_v51 = vld [vmem:[%s2134_s3 + $0x50] sm:$0xff]  }
  0x1d   : > { %1601 = vmatpush3.bf16.msra.mxu1 %v1747_v11  ;;  %1582 = vmatprep.subr.bf16.mxu0 %v1748_v16  ;;  %v640_v30 = vrot.slane %v638_v25, 1 }
  0x1e   : > { %1602 = vmatprep.subr.bf16.mxu1 %v1749_v17  ;;  %v931_v57 = vrot.slane %v929_v54, 1  ;;  %v1798_v54 = vld [vmem:[%s2134_s3 + $0x60] sm:$0xff]  }
  0x1f   : > { %v641_v31 = vsel %vm629_vm0, %v636_v26, %v640_v30  ;;  %v644_v39 = vor.u32 %v642_v38, %v640_v30 }
  0x20   : > { %1583 = vmatpush3.bf16.msra.mxu0 %v1748_v16  ;;  %v932_v59 = vsel %vm629_vm0, %v927_v56, %v931_v57  ;;  %v1799_v56 = vld [vmem:[%s2134_s3 + $0x68] sm:$0xff]  }
  0x21   : > { %1603 = vmatpush3.bf16.msra.mxu1 %v1749_v17  ;;  %1584 = vmatprep.subr.bf16.mxu0 %v1750_v19 }
  0x22   : > { %1604 = vmatprep.subr.bf16.mxu1 %v1751_v20 }
  0x24   : > { %1585 = vmatpush3.bf16.msra.mxu0 %v1750_v19 }
  0x25   : > { %1605 = vmatpush3.bf16.msra.mxu1 %v1751_v20  ;;  %1610 = vmatprep.subr.bf16.mxu0 %v1758_v24 }
  0x26   : > { %1630 = vmatprep.subr.bf16.mxu1 %v1826_v41 }
  0x27   : > { %1587 = vmatmul.mubr.bf16.vlgmr.msra.gmra.mrb[0].mxu0 %v403_v27 }
  0x28   : > { %1607 = vmatmul.mubr.bf16.vlgmr.msra.gmra.mrb[0].mxu1 %v385_v28  ;;  %1611 = vmatpush3.bf16.msra.mxu0 %v1758_v24 }
  0x29   : > { %1612 = vmatprep.subr.bf16.mxu0 %v1759_v29  ;;  %1626 = vmatprep.mubr.bf16.mxu0 %v641_v31 }
  0x2a   : > { %1631 = vmatpush3.bf16.msra.mxu1 %v1773_v43  ;;  %1646 = vmatprep.mubr.msk.bf16.mxu1 %vm1827_vm1, %v1826_v41 }
  0x2b   : > { %1632 = vmatprep.subr.bf16.mxu1 %v1826_v41 }
  0x2c   : > { %1613 = vmatpush3.bf16.msra.mxu0 %v1759_v29 }
  0x2d   : > { %1614 = vmatprep.subr.bf16.mxu0 %v1760_v32 }
  0x2e   : > { %1633 = vmatpush3.bf16.msra.mxu1 %v1775_v55 }
  0x2f   : > { %1634 = vmatprep.subr.bf16.mxu1 %v1826_v41 }
  0x30   : > { %1615 = vmatpush3.bf16.msra.mxu0 %v1760_v32 }
  0x31   : > { %1616 = vmatprep.subr.bf16.mxu0 %v1761_v33 }
  0x32   : > { %1635 = vmatpush3.bf16.msra.mxu1 %v1777_v60  ;;  %v1801_v60 = vld [vmem:[%s2134_s3 + $0x78] sm:$0xff]  }
  0x33   : > { %1636 = vmatprep.subr.bf16.mxu1 %v1826_v41 }
  0x34   : > { %1617 = vmatpush3.bf16.msra.mxu0 %v1761_v33 }
  0x35   : > { %1618 = vmatprep.subr.bf16.mxu0 %v1762_v34 }
  0x36   : > { %1637 = vmatpush3.bf16.msra.mxu1 %v1779_v62 }
  0x37   : > { %1638 = vmatprep.subr.bf16.mxu1 %v1826_v41 }
  0x38   : > { %1619 = vmatpush3.bf16.msra.mxu0 %v1762_v34 }
  0x39   : > { %1620 = vmatprep.subr.bf16.mxu0 %v1763_v35 }
  0x3a   : > { %1639 = vmatpush3.bf16.msra.mxu1 %v1781_v0 }
  0x3b   : > { %1640 = vmatprep.subr.bf16.mxu1 %v1826_v41 }
  0x3c   : > { %1621 = vmatpush3.bf16.msra.mxu0 %v1763_v35 }
  0x3d   : > { %1622 = vmatprep.subr.bf16.mxu0 %v1764_v36 }
  0x3e   : > { %1641 = vmatpush3.bf16.msra.mxu1 %v1783_v2 }
  0x3f   : > { %1642 = vmatprep.subr.bf16.mxu1 %v1826_v41 }
  0x40   : > { %1623 = vmatpush3.bf16.msra.mxu0 %v1764_v36 }
  0x41   : > { %1624 = vmatprep.subr.bf16.mxu0 %v1765_v37 }
  0x42   : > { %1643 = vmatpush3.bf16.msra.mxu1 %v1785_v4 }
  0x43   : > { %1644 = vmatprep.subr.bf16.mxu1 %v1826_v41 }
  0x44   : > { %1625 = vmatpush3.bf16.msra.mxu0 %v1765_v37 }
  0x45   : > { %1650 = vmatprep.subr.bf16.mxu0 %v1826_v41 }
  0x46   : > { %1645 = vmatpush3.bf16.msra.mxu1 %v1787_v6 }
  0x47   : > { %1627 = vmatmul.mubr.bf16.vlgmr.msra.gmra.mrb[4].mxu0 %v644_v39  ;;  %1670 = vmatprep.subr.bf16.mxu1 %v1826_v41 }
  0x48   : > { %1651 = vmatpush3.bf16.msra.mxu0 %v1766_v40  ;;  %1666 = vmatprep.mubr.msk.bf16.mxu0 %vm1827_vm1, %v1826_v41  ;;  %v1790_v40 = vld [vmem:[%s2134_s3 + $0x40] sm:$0xff]  }
  0x49   : > { %1652 = vmatprep.subr.bf16.mxu0 %v1826_v41 }
  0x4c   : > { %1653 = vmatpush3.bf16.msra.mxu0 %v1767_v42 }
  0x4d   : > { %1654 = vmatprep.subr.bf16.mxu0 %v1826_v41 }
  0x50   : > { %1655 = vmatpush3.bf16.msra.mxu0 %v1768_v44 }
  0x51   : > { %1656 = vmatprep.subr.bf16.mxu0 %v1826_v41 }
  0x54   : > { %1657 = vmatpush3.bf16.msra.mxu0 %v1769_v45 }
  0x55   : > { %1658 = vmatprep.subr.bf16.mxu0 %v1826_v41 }
  0x58   : > { %1659 = vmatpush3.bf16.msra.mxu0 %v1770_v46 }
  0x59   : > { %1660 = vmatprep.subr.bf16.mxu0 %v1826_v41 }
  0x5c   : > { %1661 = vmatpush3.bf16.msra.mxu0 %v1771_v47  ;;  %v1795_v47 = vld [vmem:[%s2134_s3 + $0x48] sm:$0xff]  }
  0x5d   : > { %1662 = vmatprep.subr.bf16.mxu0 %v1826_v41 }
  0x60   : > { %1663 = vmatpush3.bf16.msra.mxu0 %v1772_v48 }
  0x61   : > { %1664 = vmatprep.subr.bf16.mxu0 %v1826_v41 }
  0x64   : > { %1665 = vmatpush3.bf16.msra.mxu0 %v1774_v49 }
  0x65   : > { %1690 = vmatprep.subr.bf16.mxu0 %v1826_v41 }
  0x67   : > { %1667 = vmatmul.mubr.bf16.vlgmr.msra.gmra.mrb[8].mxu0 %v932_v59 }
  0x68   : > { %1691 = vmatpush3.bf16.msra.mxu0 %v1776_v58  ;;  %1706 = vmatprep.mubr.msk.bf16.mxu0 %vm1827_vm1, %v1826_v41  ;;  %v1800_v58 = vld [vmem:[%s2134_s3 + $0x70] sm:$0xff]  }
  0x69   : > { %1692 = vmatprep.subr.bf16.mxu0 %v1826_v41 }
  0x6c   : > { %1693 = vmatpush3.bf16.msra.mxu0 %v1778_v61 }
  0x6d   : > { %1694 = vmatprep.subr.bf16.mxu0 %v1826_v41 }
  0x70   : > { %1695 = vmatpush3.bf16.msra.mxu0 %v1780_v63 }
  0x71   : > { %1696 = vmatprep.subr.bf16.mxu0 %v1826_v41 }
  0x74   : > { %1697 = vmatpush3.bf16.msra.mxu0 %v1782_v1 }
  0x75   : > { %1698 = vmatprep.subr.bf16.mxu0 %v1826_v41 }
  0x78   : > { %1699 = vmatpush3.bf16.msra.mxu0 %v1784_v3 }
  0x79   : > { %1700 = vmatprep.subr.bf16.mxu0 %v1826_v41 }
  0x7c   : > { %1701 = vmatpush3.bf16.msra.mxu0 %v1786_v5 }
  0x7d   : > { %1702 = vmatprep.subr.bf16.mxu0 %v1826_v41 }
  0x80   : > { %1703 = vmatpush3.bf16.msra.mxu0 %v1788_v7 }
  0x81   : > { %1704 = vmatprep.subr.bf16.mxu0 %v1826_v41 }
  0x84   : > { %1705 = vmatpush3.bf16.msra.mxu0 %v1791_v8 }
  0xfa   : > { %v1588_v9 = vpop.f32.mrb[0].mxu0 }
  0xfb   : > { %v1608_v10 = vpop.f32.mrb[0].mxu1  ;;  %v502_v11 = vpop.f32.mrb[1].mxu0 }
  0xfc   : > { %v607_v12 = vadd.f32 %v1608_v10, %v1588_v9  ;;  %v598_v13 = vpop.f32.mrb[1].mxu1  ;;  %v1589_v14 = vpop.f32.mrb[2].mxu0 }
  0xfd   : > { %v599_v15 = vadd.f32 %v598_v13, %v502_v11  ;;  %v1609_v16 = vpop.f32.mrb[2].mxu1  ;;  %v505_v17 = vpop.f32.mrb[3].mxu0 }
  0xfe   : > { %v601_v18 = vpop.f32.mrb[3].mxu1 }
  0xff   : > { %v602_v19 = vadd.f32 %v601_v18, %v505_v17  ;;  %v1481_v18 = vld [vmem:[%s2137_s6] ss:$0 sm:$0xff] }
 0x11a   : > { %v1628_v20 = vpop.f32.mrb[4].mxu0 }
 0x11b   : > { %v745_v22 = vadd.f32 %v1628_v20, %v607_v12  ;;  %v729_v23 = vpop.f32.mrb[5].mxu0 }
 0x11c   : > { %v743_v24 = vadd.f32 %v729_v23, %v599_v15  ;;  %v1629_v25 = vpop.f32.mrb[6].mxu0 }
 0x11d   : > { %v755_v26 = vadd.f32 %v1441_v21, %v745_v22  ;;  %v732_v27 = vpop.f32.mrb[7].mxu0 }
 0x11e   : > { %v753_v28 = vadd.f32 %v1441_v21, %v743_v24  ;;  %v744_v29 = vadd.f32 %v732_v27, %v602_v19 }
 0x11f   : > { %v758_v30 = vmax.f32 %v755_v26, 0.0 }
 0x120   : > { %v754_v31 = vadd.f32 %v1441_v21, %v744_v29  ;;  %v756_v33 = vmax.f32 %v753_v28, 0.0 }
 0x121   : > { %v1491_v32 = vpack.c.bf16 %v758_v30, %v758_v30 }
 0x122   : > { %v757_v34 = vmax.f32 %v754_v31, 0.0 }
 0x123   : > { %774 = vst [vmem:[#allocation3 + $0x8] sm:$0x1] %v1491_v32 }
 0x124   : > { %v1497_v35 = vpack.c.bf16 %v757_v34, %v756_v33 }
 0x126   : > { %1498 = vst [vmem:[#allocation3] sm:$0xff] %v1497_v35  }
 0x12a   : > { %v1793_v42 = vld [vmem:[#allocation3 + $0x8] ss:$0 sps:$4 sm:$0x11]  }
 0x12b   : > { %v1176_v49 = vrot.slane %v1793_v42, 1  ;;  %v1058_v62 = vshll.u32 %v1793_v42, 16 }
 0x12d   : > { %v782_v36 = vld [vmem:[#allocation3] sm:$0x1]  ;;  %v787_v37 = vld [vmem:[#allocation3 + $0x4] sm:$0x1]  ;;  %v1154_v45 = vld [vmem:[#allocation3] sm:$0xe] }
 0x12e   : > { %v783_v38 = vsel %vm781_vm5, 0, %v782_v36  ;;  %v788_v39 = vsel %vm786_vm6, 0, %v787_v37  ;;  %v1060_v0 = vrot.slane %v1058_v62, 1 }
 0x12f   : > { %784 = vst [vmem:[#allocation3] sm:$0x1] %v783_v38  ;;  %789 = vst [vmem:[#allocation3 + $0x4] sm:$0x1] %v788_v39 }
 0x136   : > { %v1789_v43 = vld [vmem:[#allocation3] sm:$0xff]  }
 0x137   : > { %v1024_v44 = vld [vmem:[#allocation3 + $0x4] sm:$0xf]  ;;  %1647 = vmatmul.mubr.bf16.vlgmr.msra.gmra.mrb[4].mxu1 %v1789_v43  ;;  %v1023_v53 = vld [vmem:[#allocation3] sm:$0xf] }
 0x138   : > { %v1472_v46 = vcombine.low %v1154_v45, %v1024_v44  ;;  %1671 = vmatpush3.bf16.msra.mxu1 %v1790_v40  ;;  %1686 = vmatprep.mubr.msk.bf16.mxu1 %vm1827_vm1, %v1826_v41  ;;  %v1462_v55 = vcombine.low %v1023_v53, %v1024_v44 }
 0x139   : > { %1672 = vmatprep.subr.bf16.mxu1 %v1826_v41 }
 0x13a   : > { %v1175_v48 = vrot.slane %v1472_v46, 1  ;;  %v1053_v57 = vshll.u32 %v1462_v55, 16  ;;  %v1051_v61 = vshrl.u32 %v1462_v55, 16  ;;  %v1016_v2 = vpop.f32.mrb[8].mxu0 }
 0x13b   : > { %v1668_v3 = vpop.f32.mrb[9].mxu0 }
 0x13c   : > { %v1177_v50 = vsel %vm1174_vm7, %v1175_v48, %v1176_v49  ;;  %1673 = vmatpush3.bf16.msra.mxu1 %v1795_v47  ;;  %v1055_v59 = vrot.slane %v1053_v57, 1  ;;  %v1019_v4 = vpop.f32.mrb[10].mxu0 }
 0x13d   : > { %1707 = vmatmul.mubr.bf16.vlgmr.msra.gmra.mrb[12].mxu0 %v1177_v50  ;;  %1674 = vmatprep.subr.bf16.mxu1 %v1826_v41  ;;  %v1669_v5 = vpop.f32.mrb[11].mxu0 }
 0x13e   : > { %v1056_v63 = vor.u32 %v1055_v59, %v1051_v61 }
 0x140   : > { %1675 = vmatpush3.bf16.msra.mxu1 %v1796_v51  ;;  %v1061_v1 = vsel %vm629_vm0, %v1056_v63, %v1060_v0 }
 0x141   : > { %1676 = vmatprep.subr.bf16.mxu1 %v1826_v41 }
 0x144   : > { %1677 = vmatpush3.bf16.msra.mxu1 %v1797_v52 }
 0x145   : > { %1678 = vmatprep.subr.bf16.mxu1 %v1826_v41 }
 0x148   : > { %1679 = vmatpush3.bf16.msra.mxu1 %v1798_v54 }
 0x149   : > { %1680 = vmatprep.subr.bf16.mxu1 %v1826_v41 }
 0x14c   : > { %1681 = vmatpush3.bf16.msra.mxu1 %v1799_v56 }
 0x14d   : > { %1682 = vmatprep.subr.bf16.mxu1 %v1826_v41 }
 0x150   : > { %1683 = vmatpush3.bf16.msra.mxu1 %v1800_v58 }
 0x151   : > { %1684 = vmatprep.subr.bf16.mxu1 %v1826_v41 }
 0x154   : > { %1685 = vmatpush3.bf16.msra.mxu1 %v1801_v60 }
 0x157   : > { %1687 = vmatmul.mubr.bf16.vlgmr.msra.gmra.mrb[8].mxu1 %v1061_v1 }
 0x20a   : > { %v914_v6 = vpop.f32.mrb[4].mxu1 }
 0x20b   : > { %v1017_v7 = vadd.f32 %v1016_v2, %v914_v6  ;;  %v1648_v8 = vpop.f32.mrb[5].mxu1 }
 0x20c   : > { %v917_v9 = vpop.f32.mrb[6].mxu1 }
 0x20d   : > { %v1020_v10 = vadd.f32 %v1019_v4, %v917_v9  ;;  %v1649_v11 = vpop.f32.mrb[7].mxu1 }
 0x210   : > { %v1261_v12 = vpop.f32.mrb[12].mxu0 }
 0x211   : > { %v1708_v13 = vpop.f32.mrb[13].mxu0 }
 0x212   : > { %v1264_v41 = vpop.f32.mrb[14].mxu0 }
 0x213   : > { %v1709_v14 = vpop.f32.mrb[15].mxu0 }
 0x22a   : > { %v1145_v15 = vpop.f32.mrb[8].mxu1 }
 0x22b   : > { %v1152_v16 = vadd.f32 %v1145_v15, %v1017_v7  ;;  %v1688_v17 = vpop.f32.mrb[9].mxu1 }
 0x22c   : > { %v1148_v19 = vpop.f32.mrb[10].mxu1 }
 0x22d   : > { %v1268_v20 = vadd.f32 %v1261_v12, %v1152_v16  ;;  %v1153_v21 = vadd.f32 %v1148_v19, %v1020_v10  ;;  %v1689_v22 = vpop.f32.mrb[11].mxu1 }
 0x22f   : > { %v1277_v23 = vadd.f32 %v1481_v18, %v1268_v20  ;;  %v1269_v24 = vadd.f32 %v1264_v41, %v1153_v21 }
 0x231   : > { %v1278_v25 = vadd.f32 %v1481_v18, %v1269_v24  ;;  %v1279_v26 = vmax.f32 %v1277_v23, 0.0 }
 0x233   : > { %v1280_v27 = vmax.f32 %v1278_v25, 0.0 }
 0x235   : > { %v1502_v28 = vpack.c.bf16 %v1280_v27, %v1279_v26 }
 0x237   : > { %1503 = vst [vmem:[%s353_s18] sm:$0xff] %v1502_v28  }
 0x238 PF: > { %s17_s26 = sadd.s32 1, %s1824_s26   ;;  %s2139_s24 = smov %s1820_s25 }
 0x239   : > { %p14_p5 = scmp.ge.s32.totalorder %s17_s26, 4   ;;  %s2140_s25 = smov %s2142_s27 }
 0x23b   :  { %16 = sbr.rel (!%p14_p5) target bundleno = 2 (0x2), region = 85 }

</bundles_post_ra>
